<compile_context>
chip_gen: v7x
topology: tpu7x:2x2x1
jax: 0.10.0
libtpu: 0.0.40
codegen_flags: <defaults>
</compile_context>

<pallas_src>
import jax
import jax.numpy as jnp
import numpy as np
from jax.experimental import pallas as pl
from jax.experimental.pallas import tpu as pltpu


def _round_up(x, m):
    return (x + m - 1) // m * m


def _fusion_kernel(x1_ref, x2_ref, x4_ref, w1_ref, w2_ref, a_ref, o_ref):
    # x*_ref : [Bb, C, TS]  tile of pixels per branch (native NCHW layout)
    # w1_ref : [Hp, 3C]     block-diagonal first 1x1 conv weights
    # w2_ref : [3C, Hp]     block-diagonal second 1x1 conv weights
    # a_ref  : [Hp, 1]      PReLU per-channel slopes (stacked per gate)
    # o_ref  : [Bb, C, TS]
    bb, C, _ = x1_ref.shape
    w1 = w1_ref[...]
    w2 = w2_ref[...]
    a = a_ref[...]

    for b in range(bb):  # small, static unroll over the batch rows in the block
        x1 = x1_ref[b].astype(jnp.float32)      # [C, TS]
        x2 = x2_ref[b].astype(jnp.float32)
        x4 = x4_ref[b].astype(jnp.float32)

        # Fused 1x1 conv #1 for all three gates as three accumulating dots
        # (no [3C, TS] concat temporary).  [Hp, C] @ [C, TS] -> [Hp, TS]
        h = jnp.dot(w1[:, :C], x1, preferred_element_type=jnp.float32)
        h = h + jnp.dot(w1[:, C:2 * C], x2, preferred_element_type=jnp.float32)
        h = h + jnp.dot(w1[:, 2 * C:], x4, preferred_element_type=jnp.float32)

        # PReLU with per-(gate,channel) slope, broadcast over pixels (lanes).
        h = jnp.where(h > 0, h, h * a)

        # Fused 1x1 conv #2: [3C, Hp] @ [Hp, TS] -> [3C, TS]
        s = jnp.dot(w2, h, preferred_element_type=jnp.float32)

        # sigmoid via the exact tanh identity (single EUP op per element).
        g = 0.5 * (1.0 + jnp.tanh(0.5 * s))     # values in (0, 1)

        # exp(g) for g in (0,1): degree-6 Taylor around 0.5 on the VALU
        # (keeps the single EUP slot free for the tanh).  Max rel err ~4e-6.
        t = g - 0.5
        p = 1.0 + t * (1.0 + t * (0.5 + t * (1.0 / 6.0 + t * (
            1.0 / 24.0 + t * (1.0 / 120.0 + t * (1.0 / 720.0))))))
        e = 1.6487212707001282 * p              # e^0.5 * exp(g - 0.5)

        # 3-way softmax across gates; no max-subtraction needed (g bounded).
        e1 = e[:C]
        e2 = e[C:2 * C]
        e3 = e[2 * C:3 * C]
        den = e1 + e2 + e3

        out = (x1 * e1 + x2 * e2 + x4 * e3) / den   # exact divide
        o_ref[b] = out.astype(o_ref.dtype)


def _block_diag_params(w1, w2, alpha):
    """Build block-diagonal fused weights.

    w1: [3, Ch, C] (conv1 weight, out x in), w2: [3, C, Ch], alpha: [3, Ch].
    Returns (W1blk [Hp, 3C], W2blk [3C, Hp], alpha_blk [Hp, 1]) with
    Hp = round_up(3*Ch, 8) so the hidden dim is sublane-aligned.  The padded
    hidden rows are all-zero in W1blk / all-zero columns in W2blk, so they do
    not affect the result.
    """
    G, Ch, C = w1.shape
    Hp = _round_up(G * Ch, 8)
    w1b = jnp.zeros((Hp, G * C), dtype=jnp.float32)
    w2b = jnp.zeros((G * C, Hp), dtype=jnp.float32)
    ab = jnp.ones((Hp, 1), dtype=jnp.float32)
    for g in range(G):
        w1b = w1b.at[g * Ch:(g + 1) * Ch, g * C:(g + 1) * C].set(
            w1[g].astype(jnp.float32))
        w2b = w2b.at[g * C:(g + 1) * C, g * Ch:(g + 1) * Ch].set(
            w2[g].astype(jnp.float32))
        ab = ab.at[g * Ch:(g + 1) * Ch, 0].set(alpha[g].astype(jnp.float32))
    return w1b, w2b, ab


def feature_fusion(x1, x2, x4, params, *, tile_s=4096, vmem_budget=20 << 20):
    """x*: NCHW [B, C, H, W]. Returns NCHW output matching the PyTorch module.

    Works for f32 or bf16 inputs (compute is f32; output dtype == input dtype).
    NOTE: C that is not a multiple of 8 is correct but may incur small
    retiling copies on the in-kernel channel slices.
    """
    B, C, H, W = x1.shape
    S = H * W
    w1, w2, alpha = params
    w1b, w2b, ab = _block_diag_params(w1, w2, alpha)

    itemsize = jnp.dtype(x1.dtype).itemsize
    # Rough VMEM bytes per pixel per batch row in a block:
    # 4 double-buffered I/O streams + f32 in-kernel temporaries.
    bytes_per_px = C * (8 * itemsize + 64)
    ts_budget = max(128, (vmem_budget // bytes_per_px) // 128 * 128)
    ts_cap = min(tile_s, ts_budget)

    if S <= ts_cap:
        # Small spatial extent: take the whole pixel row and fold several batch
        # rows into one block so each grid step still moves a sizeable DMA.
        ts = S
        bb = max(1, min(B, ts_cap // max(S, 1)))
        while B % bb:              # keep batch blocks even (no ragged batch tile)
            bb -= 1
        grid = (B // bb, 1)
    else:
        # Large spatial extent: one batch row per block, big lane-dense tiles.
        # The last (possibly partial) tile is handled by Pallas OOB semantics.
        ts = ts_cap
        bb = 1
        grid = (B, pl.cdiv(S, ts))

    def as_bcs(x):
        return x.reshape(B, C, S)  # free reshape: NCHW is contiguous over H*W

    x_spec = pl.BlockSpec((bb, C, ts), lambda b, s: (b, 0, s))
    w1_spec = pl.BlockSpec(w1b.shape, lambda b, s: (0, 0))
    w2_spec = pl.BlockSpec(w2b.shape, lambda b, s: (0, 0))
    a_spec = pl.BlockSpec(ab.shape, lambda b, s: (0, 0))

    out = pl.pallas_call(
        _fusion_kernel,
        out_shape=jax.ShapeDtypeStruct((B, C, S), x1.dtype),
        grid_spec=pltpu.PrefetchScalarGridSpec(
            num_scalar_prefetch=0,
            grid=grid,
            in_specs=[x_spec, x_spec, x_spec, w1_spec, w2_spec, a_spec],
            out_specs=pl.BlockSpec((bb, C, ts), lambda b, s: (b, 0, s)),
        ),
        compiler_params=pltpu.CompilerParams(
            dimension_semantics=("parallel", "parallel")),
    )(as_bcs(x1), as_bcs(x2), as_bcs(x4), w1b, w2b, ab)

    return out.reshape(B, C, H, W)


def init_params(key, in_channels, reduct=8):
    """Deterministic synthetic parameters (same shapes as the PyTorch module)."""
    Ch = in_channels // reduct
    k1, k2 = jax.random.split(key)
    # Conv2d #1 weight [Ch, C, 1, 1] -> [3, Ch, C]; Conv2d #2 -> [3, C, Ch].
    w1 = 0.1 * jax.random.normal(k1, (3, Ch, in_channels), dtype=jnp.float32)
    w2 = 0.1 * jax.random.normal(k2, (3, in_channels, Ch), dtype=jnp.float32)
    # PReLU default init in PyTorch is 0.25 per channel.
    alpha = jnp.full((3, Ch), 0.25, dtype=jnp.float32)
    return w1, w2, alpha


def feature_fusion_reference(x1, x2, x4, params):
    """Pure-JAX reference mirroring the PyTorch forward (NCHW)."""
    w1, w2, alpha = params

    def gate(x, g):
        h = jnp.einsum("dc,bchw->bdhw", w1[g], x)
        a = alpha[g][None, :, None, None]
        h = jnp.where(h > 0, h, h * a)
        s = jnp.einsum("cd,bdhw->bchw", w2[g], h)
        return jax.nn.sigmoid(s)

    c1 = gate(x1, 0)[..., None]
    c2 = gate(x2, 1)[..., None]
    c4 = gate(x4, 2)[..., None]
    coef = jax.nn.softmax(jnp.concatenate([c1, c2, c4], axis=-1), axis=-1)
    return x1 * coef[..., 0] + x2 * coef[..., 1] + x4 * coef[..., 2]


if __name__ == "__main__":
    B, C, H, W = 2, 32, 16, 16   # in_channels=32, reduct=8 -> hidden=4
    reduct = 8

    key = jax.random.PRNGKey(0)
    kx1, kx2, kx4, kp = jax.random.split(key, 4)
    x1 = jax.random.normal(kx1, (B, C, H, W), dtype=jnp.float32)
    x2 = jax.random.normal(kx2, (B, C, H, W), dtype=jnp.float32)
    x4 = jax.random.normal(kx4, (B, C, H, W), dtype=jnp.float32)

    params = init_params(kp, C, reduct)

    out = feature_fusion(x1, x2, x4, params)
    out = jax.block_until_ready(out)

    ref = feature_fusion_reference(x1, x2, x4, params)
    np.testing.assert_allclose(np.asarray(out), np.asarray(ref),
                               rtol=2e-3, atol=2e-3)

    print("KERNEL_OK")
</pallas_src>

<mosaic_0001>
module attributes {stable_mosaic.version = 11 : i64} {
  func.func @_fusion_kernel(%arg0: i32, %arg1: i32, %arg2: memref<2x32x256xf32, #tpu.memory_space<vmem>>, %arg3: memref<2x32x256xf32, #tpu.memory_space<vmem>>, %arg4: memref<2x32x256xf32, #tpu.memory_space<vmem>>, %arg5: memref<16x96xf32, #tpu.memory_space<vmem>>, %arg6: memref<96x16xf32, #tpu.memory_space<vmem>>, %arg7: memref<16x1xf32, #tpu.memory_space<vmem>>, %arg8: memref<2x32x256xf32, #tpu.memory_space<vmem>>) attributes {dimension_semantics = [#tpu.dimension_semantics<parallel>, #tpu.dimension_semantics<parallel>], iteration_bounds = array<i64: 1, 1>, scalar_prefetch = 0 : i64, scratch_operands = 0 : i64, tpu.core_type = #tpu.core_type<tc>, window_params = [{transform_indices = @transform_0, window_bounds = array<i64: 2, 32, 256>}, {transform_indices = @transform_1, window_bounds = array<i64: 2, 32, 256>}, {transform_indices = @transform_2, window_bounds = array<i64: 2, 32, 256>}, {pipeline_mode = #tpu.pipeline_mode<synchronous>, transform_indices = @transform_3, window_bounds = array<i64: 16, 96>}, {pipeline_mode = #tpu.pipeline_mode<synchronous>, transform_indices = @transform_4, window_bounds = array<i64: 96, 16>}, {pipeline_mode = #tpu.pipeline_mode<synchronous>, transform_indices = @transform_5, window_bounds = array<i64: 16, 1>}, {transform_indices = @transform_6, window_bounds = array<i64: 2, 32, 256>}]} {
    %c0 = arith.constant 0 : index
    %c0_0 = arith.constant 0 : index
    %0 = vector.load %arg5[%c0, %c0_0] : memref<16x96xf32, #tpu.memory_space<vmem>>, vector<16x96xf32>
    %c0_1 = arith.constant 0 : index
    %c0_2 = arith.constant 0 : index
    %1 = vector.load %arg6[%c0_1, %c0_2] : memref<96x16xf32, #tpu.memory_space<vmem>>, vector<96x16xf32>
    %c0_3 = arith.constant 0 : index
    %c0_4 = arith.constant 0 : index
    %2 = vector.load %arg7[%c0_3, %c0_4] : memref<16x1xf32, #tpu.memory_space<vmem>>, vector<16x1xf32>
    %c0_5 = arith.constant 0 : index
    %c0_6 = arith.constant 0 : index
    %c0_7 = arith.constant 0 : index
    %3 = vector.load %arg2[%c0_5, %c0_6, %c0_7] : memref<2x32x256xf32, #tpu.memory_space<vmem>>, vector<1x32x256xf32>
    %4 = vector.shape_cast %3 : vector<1x32x256xf32> to vector<32x256xf32>
    %c0_8 = arith.constant 0 : index
    %c0_9 = arith.constant 0 : index
    %c0_10 = arith.constant 0 : index
    %5 = vector.load %arg3[%c0_8, %c0_9, %c0_10] : memref<2x32x256xf32, #tpu.memory_space<vmem>>, vector<1x32x256xf32>
    %6 = vector.shape_cast %5 : vector<1x32x256xf32> to vector<32x256xf32>
    %c0_11 = arith.constant 0 : index
    %c0_12 = arith.constant 0 : index
    %c0_13 = arith.constant 0 : index
    %7 = vector.load %arg4[%c0_11, %c0_12, %c0_13] : memref<2x32x256xf32, #tpu.memory_space<vmem>>, vector<1x32x256xf32>
    %8 = vector.shape_cast %7 : vector<1x32x256xf32> to vector<32x256xf32>
    %9 = vector.extract_strided_slice %0 {offsets = [0, 0], sizes = [16, 32], strides = [1, 1]} : vector<16x96xf32> to vector<16x32xf32>
    %cst = arith.constant dense<0.000000e+00> : vector<16x256xf32>
    %10 = tpu.matmul %9, %4, %cst {dimension_numbers = #tpu.dot_dimension_numbers<[1], [0], [0], [1], [0, 0, 1, 1], [], []>} : vector<16x32xf32>, vector<32x256xf32>, vector<16x256xf32> -> vector<16x256xf32>
    %11 = vector.extract_strided_slice %0 {offsets = [0, 32], sizes = [16, 32], strides = [1, 1]} : vector<16x96xf32> to vector<16x32xf32>
    %cst_14 = arith.constant dense<0.000000e+00> : vector<16x256xf32>
    %12 = tpu.matmul %11, %6, %cst_14 {dimension_numbers = #tpu.dot_dimension_numbers<[1], [0], [0], [1], [0, 0, 1, 1], [], []>} : vector<16x32xf32>, vector<32x256xf32>, vector<16x256xf32> -> vector<16x256xf32>
    %13 = arith.addf %10, %12 : vector<16x256xf32>
    %14 = vector.extract_strided_slice %0 {offsets = [0, 64], sizes = [16, 32], strides = [1, 1]} : vector<16x96xf32> to vector<16x32xf32>
    %cst_15 = arith.constant dense<0.000000e+00> : vector<16x256xf32>
    %15 = tpu.matmul %14, %8, %cst_15 {dimension_numbers = #tpu.dot_dimension_numbers<[1], [0], [0], [1], [0, 0, 1, 1], [], []>} : vector<16x32xf32>, vector<32x256xf32>, vector<16x256xf32> -> vector<16x256xf32>
    %16 = arith.addf %13, %15 : vector<16x256xf32>
    %cst_16 = arith.constant 0.000000e+00 : f32
    %17 = vector.broadcast %cst_16 : f32 to vector<16x256xf32>
    %18 = arith.cmpf ogt, %16, %17 : vector<16x256xf32>
    %19 = vector.broadcast %2 : vector<16x1xf32> to vector<16x256xf32>
    %20 = arith.mulf %16, %19 : vector<16x256xf32>
    %21 = arith.select %18, %16, %20 : vector<16x256xi1>, vector<16x256xf32>
    %cst_17 = arith.constant dense<0.000000e+00> : vector<96x256xf32>
    %22 = tpu.matmul %1, %21, %cst_17 {dimension_numbers = #tpu.dot_dimension_numbers<[1], [0], [0], [1], [0, 0, 1, 1], [], []>} : vector<96x16xf32>, vector<16x256xf32>, vector<96x256xf32> -> vector<96x256xf32>
    %cst_18 = arith.constant 5.000000e-01 : f32
    %23 = vector.broadcast %cst_18 : f32 to vector<96x256xf32>
    %24 = arith.mulf %23, %22 : vector<96x256xf32>
    %25 = math.tanh %24 : vector<96x256xf32>
    %cst_19 = arith.constant 1.000000e+00 : f32
    %26 = vector.broadcast %cst_19 : f32 to vector<96x256xf32>
    %27 = arith.addf %26, %25 : vector<96x256xf32>
    %cst_20 = arith.constant 5.000000e-01 : f32
    %28 = vector.broadcast %cst_20 : f32 to vector<96x256xf32>
    %29 = arith.mulf %28, %27 : vector<96x256xf32>
    %cst_21 = arith.constant 5.000000e-01 : f32
    %30 = vector.broadcast %cst_21 : f32 to vector<96x256xf32>
    %31 = arith.subf %29, %30 : vector<96x256xf32>
    %cst_22 = arith.constant 0.00138888892 : f32
    %32 = vector.broadcast %cst_22 : f32 to vector<96x256xf32>
    %33 = arith.mulf %31, %32 : vector<96x256xf32>
    %cst_23 = arith.constant 0.00833333377 : f32
    %34 = vector.broadcast %cst_23 : f32 to vector<96x256xf32>
    %35 = arith.addf %34, %33 : vector<96x256xf32>
    %36 = arith.mulf %31, %35 : vector<96x256xf32>
    %cst_24 = arith.constant 0.0416666679 : f32
    %37 = vector.broadcast %cst_24 : f32 to vector<96x256xf32>
    %38 = arith.addf %37, %36 : vector<96x256xf32>
    %39 = arith.mulf %31, %38 : vector<96x256xf32>
    %cst_25 = arith.constant 0.166666672 : f32
    %40 = vector.broadcast %cst_25 : f32 to vector<96x256xf32>
    %41 = arith.addf %40, %39 : vector<96x256xf32>
    %42 = arith.mulf %31, %41 : vector<96x256xf32>
    %cst_26 = arith.constant 5.000000e-01 : f32
    %43 = vector.broadcast %cst_26 : f32 to vector<96x256xf32>
    %44 = arith.addf %43, %42 : vector<96x256xf32>
    %45 = arith.mulf %31, %44 : vector<96x256xf32>
    %cst_27 = arith.constant 1.000000e+00 : f32
    %46 = vector.broadcast %cst_27 : f32 to vector<96x256xf32>
    %47 = arith.addf %46, %45 : vector<96x256xf32>
    %48 = arith.mulf %31, %47 : vector<96x256xf32>
    %cst_28 = arith.constant 1.000000e+00 : f32
    %49 = vector.broadcast %cst_28 : f32 to vector<96x256xf32>
    %50 = arith.addf %49, %48 : vector<96x256xf32>
    %cst_29 = arith.constant 1.64872122 : f32
    %51 = vector.broadcast %cst_29 : f32 to vector<96x256xf32>
    %52 = arith.mulf %51, %50 : vector<96x256xf32>
    %53 = vector.extract_strided_slice %52 {offsets = [0, 0], sizes = [32, 256], strides = [1, 1]} : vector<96x256xf32> to vector<32x256xf32>
    %54 = vector.extract_strided_slice %52 {offsets = [32, 0], sizes = [32, 256], strides = [1, 1]} : vector<96x256xf32> to vector<32x256xf32>
    %55 = vector.extract_strided_slice %52 {offsets = [64, 0], sizes = [32, 256], strides = [1, 1]} : vector<96x256xf32> to vector<32x256xf32>
    %56 = arith.addf %53, %54 : vector<32x256xf32>
    %57 = arith.addf %56, %55 : vector<32x256xf32>
    %58 = arith.mulf %4, %53 : vector<32x256xf32>
    %59 = arith.mulf %6, %54 : vector<32x256xf32>
    %60 = arith.addf %58, %59 : vector<32x256xf32>
    %61 = arith.mulf %8, %55 : vector<32x256xf32>
    %62 = arith.addf %60, %61 : vector<32x256xf32>
    %63 = arith.divf %62, %57 : vector<32x256xf32>
    %c0_30 = arith.constant 0 : index
    %c0_31 = arith.constant 0 : index
    %c0_32 = arith.constant 0 : index
    %64 = vector.load %arg8[%c0_30, %c0_31, %c0_32] : memref<2x32x256xf32, #tpu.memory_space<vmem>>, vector<1x32x256xf32>
    %65 = vector.shape_cast %64 : vector<1x32x256xf32> to vector<32x256xf32>
    %66 = vector.shape_cast %63 : vector<32x256xf32> to vector<1x32x256xf32>
    tpu.vector_store %arg8[%c0_30, %c0_31, %c0_32], %66 {strides = array<i32>} : memref<2x32x256xf32, #tpu.memory_space<vmem>>, vector<1x32x256xf32>,
    %c1 = arith.constant 1 : index
    %c0_33 = arith.constant 0 : index
    %c0_34 = arith.constant 0 : index
    %67 = vector.load %arg2[%c1, %c0_33, %c0_34] : memref<2x32x256xf32, #tpu.memory_space<vmem>>, vector<1x32x256xf32>
    %68 = vector.shape_cast %67 : vector<1x32x256xf32> to vector<32x256xf32>
    %c1_35 = arith.constant 1 : index
    %c0_36 = arith.constant 0 : index
    %c0_37 = arith.constant 0 : index
    %69 = vector.load %arg3[%c1_35, %c0_36, %c0_37] : memref<2x32x256xf32, #tpu.memory_space<vmem>>, vector<1x32x256xf32>
    %70 = vector.shape_cast %69 : vector<1x32x256xf32> to vector<32x256xf32>
    %c1_38 = arith.constant 1 : index
    %c0_39 = arith.constant 0 : index
    %c0_40 = arith.constant 0 : index
    %71 = vector.load %arg4[%c1_38, %c0_39, %c0_40] : memref<2x32x256xf32, #tpu.memory_space<vmem>>, vector<1x32x256xf32>
    %72 = vector.shape_cast %71 : vector<1x32x256xf32> to vector<32x256xf32>
    %73 = vector.extract_strided_slice %0 {offsets = [0, 0], sizes = [16, 32], strides = [1, 1]} : vector<16x96xf32> to vector<16x32xf32>
    %cst_41 = arith.constant dense<0.000000e+00> : vector<16x256xf32>
    %74 = tpu.matmul %73, %68, %cst_41 {dimension_numbers = #tpu.dot_dimension_numbers<[1], [0], [0], [1], [0, 0, 1, 1], [], []>} : vector<16x32xf32>, vector<32x256xf32>, vector<16x256xf32> -> vector<16x256xf32>
    %75 = vector.extract_strided_slice %0 {offsets = [0, 32], sizes = [16, 32], strides = [1, 1]} : vector<16x96xf32> to vector<16x32xf32>
    %cst_42 = arith.constant dense<0.000000e+00> : vector<16x256xf32>
    %76 = tpu.matmul %75, %70, %cst_42 {dimension_numbers = #tpu.dot_dimension_numbers<[1], [0], [0], [1], [0, 0, 1, 1], [], []>} : vector<16x32xf32>, vector<32x256xf32>, vector<16x256xf32> -> vector<16x256xf32>
    %77 = arith.addf %74, %76 : vector<16x256xf32>
    %78 = vector.extract_strided_slice %0 {offsets = [0, 64], sizes = [16, 32], strides = [1, 1]} : vector<16x96xf32> to vector<16x32xf32>
    %cst_43 = arith.constant dense<0.000000e+00> : vector<16x256xf32>
    %79 = tpu.matmul %78, %72, %cst_43 {dimension_numbers = #tpu.dot_dimension_numbers<[1], [0], [0], [1], [0, 0, 1, 1], [], []>} : vector<16x32xf32>, vector<32x256xf32>, vector<16x256xf32> -> vector<16x256xf32>
    %80 = arith.addf %77, %79 : vector<16x256xf32>
    %cst_44 = arith.constant 0.000000e+00 : f32
    %81 = vector.broadcast %cst_44 : f32 to vector<16x256xf32>
    %82 = arith.cmpf ogt, %80, %81 : vector<16x256xf32>
    %83 = vector.broadcast %2 : vector<16x1xf32> to vector<16x256xf32>
    %84 = arith.mulf %80, %83 : vector<16x256xf32>
    %85 = arith.select %82, %80, %84 : vector<16x256xi1>, vector<16x256xf32>
    %cst_45 = arith.constant dense<0.000000e+00> : vector<96x256xf32>
    %86 = tpu.matmul %1, %85, %cst_45 {dimension_numbers = #tpu.dot_dimension_numbers<[1], [0], [0], [1], [0, 0, 1, 1], [], []>} : vector<96x16xf32>, vector<16x256xf32>, vector<96x256xf32> -> vector<96x256xf32>
    %cst_46 = arith.constant 5.000000e-01 : f32
    %87 = vector.broadcast %cst_46 : f32 to vector<96x256xf32>
    %88 = arith.mulf %87, %86 : vector<96x256xf32>
    %89 = math.tanh %88 : vector<96x256xf32>
    %cst_47 = arith.constant 1.000000e+00 : f32
    %90 = vector.broadcast %cst_47 : f32 to vector<96x256xf32>
    %91 = arith.addf %90, %89 : vector<96x256xf32>
    %cst_48 = arith.constant 5.000000e-01 : f32
    %92 = vector.broadcast %cst_48 : f32 to vector<96x256xf32>
    %93 = arith.mulf %92, %91 : vector<96x256xf32>
    %cst_49 = arith.constant 5.000000e-01 : f32
    %94 = vector.broadcast %cst_49 : f32 to vector<96x256xf32>
    %95 = arith.subf %93, %94 : vector<96x256xf32>
    %cst_50 = arith.constant 0.00138888892 : f32
    %96 = vector.broadcast %cst_50 : f32 to vector<96x256xf32>
    %97 = arith.mulf %95, %96 : vector<96x256xf32>
    %cst_51 = arith.constant 0.00833333377 : f32
    %98 = vector.broadcast %cst_51 : f32 to vector<96x256xf32>
    %99 = arith.addf %98, %97 : vector<96x256xf32>
    %100 = arith.mulf %95, %99 : vector<96x256xf32>
    %cst_52 = arith.constant 0.0416666679 : f32
    %101 = vector.broadcast %cst_52 : f32 to vector<96x256xf32>
    %102 = arith.addf %101, %100 : vector<96x256xf32>
    %103 = arith.mulf %95, %102 : vector<96x256xf32>
    %cst_53 = arith.constant 0.166666672 : f32
    %104 = vector.broadcast %cst_53 : f32 to vector<96x256xf32>
    %105 = arith.addf %104, %103 : vector<96x256xf32>
    %106 = arith.mulf %95, %105 : vector<96x256xf32>
    %cst_54 = arith.constant 5.000000e-01 : f32
    %107 = vector.broadcast %cst_54 : f32 to vector<96x256xf32>
    %108 = arith.addf %107, %106 : vector<96x256xf32>
    %109 = arith.mulf %95, %108 : vector<96x256xf32>
    %cst_55 = arith.constant 1.000000e+00 : f32
    %110 = vector.broadcast %cst_55 : f32 to vector<96x256xf32>
    %111 = arith.addf %110, %109 : vector<96x256xf32>
    %112 = arith.mulf %95, %111 : vector<96x256xf32>
    %cst_56 = arith.constant 1.000000e+00 : f32
    %113 = vector.broadcast %cst_56 : f32 to vector<96x256xf32>
    %114 = arith.addf %113, %112 : vector<96x256xf32>
    %cst_57 = arith.constant 1.64872122 : f32
    %115 = vector.broadcast %cst_57 : f32 to vector<96x256xf32>
    %116 = arith.mulf %115, %114 : vector<96x256xf32>
    %117 = vector.extract_strided_slice %116 {offsets = [0, 0], sizes = [32, 256], strides = [1, 1]} : vector<96x256xf32> to vector<32x256xf32>
    %118 = vector.extract_strided_slice %116 {offsets = [32, 0], sizes = [32, 256], strides = [1, 1]} : vector<96x256xf32> to vector<32x256xf32>
    %119 = vector.extract_strided_slice %116 {offsets = [64, 0], sizes = [32, 256], strides = [1, 1]} : vector<96x256xf32> to vector<32x256xf32>
    %120 = arith.addf %117, %118 : vector<32x256xf32>
    %121 = arith.addf %120, %119 : vector<32x256xf32>
    %122 = arith.mulf %68, %117 : vector<32x256xf32>
    %123 = arith.mulf %70, %118 : vector<32x256xf32>
    %124 = arith.addf %122, %123 : vector<32x256xf32>
    %125 = arith.mulf %72, %119 : vector<32x256xf32>
    %126 = arith.addf %124, %125 : vector<32x256xf32>
    %127 = arith.divf %126, %121 : vector<32x256xf32>
    %c1_58 = arith.constant 1 : index
    %c0_59 = arith.constant 0 : index
    %c0_60 = arith.constant 0 : index
    %128 = vector.load %arg8[%c1_58, %c0_59, %c0_60] : memref<2x32x256xf32, #tpu.memory_space<vmem>>, vector<1x32x256xf32>
    %129 = vector.shape_cast %128 : vector<1x32x256xf32> to vector<32x256xf32>
    %130 = vector.shape_cast %127 : vector<32x256xf32> to vector<1x32x256xf32>
    tpu.vector_store %arg8[%c1_58, %c0_59, %c0_60], %130 {strides = array<i32>} : memref<2x32x256xf32, #tpu.memory_space<vmem>>, vector<1x32x256xf32>,
    return
  }
  func.func @transform_0(%arg0: i32, %arg1: i32) -> (i32, i32, i32) {
    %c0_i32 = arith.constant 0 : i32
    %c0_i32_0 = arith.constant 0 : i32
    return %arg0, %c0_i32, %arg1 : i32, i32, i32
  }
  func.func @transform_1(%arg0: i32, %arg1: i32) -> (i32, i32, i32) {
    %c0_i32 = arith.constant 0 : i32
    %c0_i32_0 = arith.constant 0 : i32
    return %arg0, %c0_i32, %arg1 : i32, i32, i32
  }
  func.func @transform_2(%arg0: i32, %arg1: i32) -> (i32, i32, i32) {
    %c0_i32 = arith.constant 0 : i32
    %c0_i32_0 = arith.constant 0 : i32
    return %arg0, %c0_i32, %arg1 : i32, i32, i32
  }
  func.func @transform_3(%arg0: i32, %arg1: i32) -> (i32, i32) {
    %c0_i32 = arith.constant 0 : i32
    %c0_i32_0 = arith.constant 0 : i32
    %c0_i32_1 = arith.constant 0 : i32
    return %c0_i32, %c0_i32_0 : i32, i32
  }
  func.func @transform_4(%arg0: i32, %arg1: i32) -> (i32, i32) {
    %c0_i32 = arith.constant 0 : i32
    %c0_i32_0 = arith.constant 0 : i32
    %c0_i32_1 = arith.constant 0 : i32
    return %c0_i32, %c0_i32_0 : i32, i32
  }
  func.func @transform_5(%arg0: i32, %arg1: i32) -> (i32, i32) {
    %c0_i32 = arith.constant 0 : i32
    %c0_i32_0 = arith.constant 0 : i32
    %c0_i32_1 = arith.constant 0 : i32
    return %c0_i32, %c0_i32_0 : i32, i32
  }
  func.func @transform_6(%arg0: i32, %arg1: i32) -> (i32, i32, i32) {
    %c0_i32 = arith.constant 0 : i32
    %c0_i32_0 = arith.constant 0 : i32
    return %arg0, %c0_i32, %arg1 : i32, i32, i32
  }
}

</mosaic_0001>

<bundles_post_ra>
// kernel: tpu_custom_call.1
= control target key start
LH: loop header
LB: loop body
LE: loop exit
PB: predicated region body
PF: predicated region fallthrough
CT: control target
= control target key end

     0   :  { %11 = vsyncpa [#allocation3], 0  ;;  %s3527_s0 = inlined_call_operand.vmem [shape: f32[2,32,256], index: 0, kind: input, shape index: {}]   ;;  %s3528_s1 = inlined_call_operand.hbm [shape: f32[2,32,256], index: 1, kind: input, shape index: {}]   ;;  %s3529_s2 = inlined_call_operand.hbm [shape: f32[2,32,256], index: 2, kind: input, shape index: {}]   ;;  %s3530_s3 = inlined_call_operand.hbm [shape: f32[16,96], index: 3, kind: input, shape index: {}]   ;;  %s3531_s4 = inlined_call_operand.vmem [shape: f32[96,16], index: 4, kind: input, shape index: {}]   ;;  %s3532_s5 = inlined_call_operand.vmem [shape: f32[16,1], index: 5, kind: input, shape index: {}]   ;;  %s3533_s6 = inlined_call_operand.hbm [shape: f32[2,32,256], index: 6, kind: output, shape index: {}]  }
   0x1   :  { %12 = vsyncpa [#allocation6], 0 }
   0x2   :  { %13 = vsyncpa [#allocation4], 0  ;;  %s2463_s21 = smov [#allocation5]   ;;  %s2464_s23 = smov [#allocation2]  }
   0x3   :  { %s33_s22 = sshll.u32 %s2463_s21, 4  ;;  %s21_s24 = sshll.u32 %s2464_s23, 4  ;;  %s34_s22 = int_to_ptr.vmem [resolvable:$true] %s33_s22  ;;  %s2510_s24 = int_to_ptr.vmem [resolvable:$true] %s21_s24 }
   0x4   :  { %s2369_s27 = scalar_lea.hbm %s3529_s2, 2048 }
   0x5   :  { %p2370_p0 = scmp.ne.s32.totalorder %s3529_s2, %s2369_s27  ;;  %p2373_p1 = scmp.lt.u32.totalorder %s2369_s27, %s3529_s2 }
   0x7   :  { %p2375_p2 = pnand %p2373_p1, %p2370_p0 }
   0x9   :  { %2378 = shalt.err (!%p2375_p2)
}
   0xa   :  { %s2379_s8 = scalar_lea.vmem %s34_s22, 2048  ;;  %p2384_p4 = scmp.lt.s32.totalorder %s34_s22, %s34_s22 }
   0xb   :  { %p2380_p3 = scmp.ne.s32.totalorder %s34_s22, %s2379_s8  ;;  %p2385_p5 = scmp.lt.s32.totalorder %s2379_s8, %s2379_s8 }
   0xd   :  { %p2386_p6 = por %p2385_p5, %p2384_p4 }
   0xf   :  { %p2387_p7 = pnand %p2386_p6, %p2380_p3 }
  0x11   :  { %2390 = shalt.err (!%p2387_p7)
}
  0x12   :  { %s2465_s9 = smov 256   ;;  %s2466_s10 = smov 16  }
  0x13   :  { %39 = dma.hbm_to_vmem [thread:$0]  %s3529_s2, 2048, %s34_s22, [#allocation6], %s2465_s9, %s2465_s9, %s2466_s10  }
  0x14   :  { %s2391_s15 = scalar_lea.hbm %s3528_s1, 2048 }
  0x15   :  { %p2392_p8 = scmp.ne.s32.totalorder %s3528_s1, %s2391_s15  ;;  %p2395_p9 = scmp.lt.u32.totalorder %s2391_s15, %s3528_s1 }
  0x17   :  { %p2397_p10 = pnand %p2395_p9, %p2392_p8 }
  0x19   :  { %2400 = shalt.err (!%p2397_p10)
}
  0x1a   :  { %s2401_s20 = scalar_lea.vmem %s2510_s24, 2048  ;;  %p2406_p12 = scmp.lt.s32.totalorder %s2510_s24, %s2510_s24 }
  0x1b   :  { %p2402_p11 = scmp.ne.s32.totalorder %s2510_s24, %s2401_s20  ;;  %p2407_p13 = scmp.lt.s32.totalorder %s2401_s20, %s2401_s20 }
  0x1d   :  { %p2408_p0 = por %p2407_p13, %p2406_p12 }
  0x1f   :  { %p2409_p1 = pnand %p2408_p0, %p2402_p11 }
  0x21   :  { %2412 = shalt.err (!%p2409_p1)
}
  0x22   :  { %27 = dma.hbm_to_vmem [thread:$0]  %s3528_s1, 2048, %s2510_s24, [#allocation3], %s2465_s9, %s2465_s9, %s2466_s10  }
  0x23   :  { %s2467_s22 = smov [#allocation7]   ;;  %s2413_s27 = scalar_lea.hbm %s3530_s3, 256 }
  0x24   :  { %s45_s23 = sshll.u32 %s2467_s22, 4  ;;  %p2414_p2 = scmp.ne.s32.totalorder %s3530_s3, %s2413_s27  ;;  %s46_s23 = int_to_ptr.vmem [resolvable:$true] %s45_s23 }
  0x25   :  { %p2417_p3 = scmp.lt.u32.totalorder %s2413_s27, %s3530_s3 }
  0x27   :  { %p2419_p4 = pnand %p2417_p3, %p2414_p2 }
  0x29   :  { %2422 = shalt.err (!%p2419_p4)
}
  0x2a   :  { %s2423_s8 = scalar_lea.vmem %s46_s23, 256  ;;  %p2428_p6 = scmp.lt.s32.totalorder %s46_s23, %s46_s23 }
  0x2b   :  { %p2424_p5 = scmp.ne.s32.totalorder %s46_s23, %s2423_s8  ;;  %p2429_p7 = scmp.lt.s32.totalorder %s2423_s8, %s2423_s8 }
  0x2d   :  { %p2430_p8 = por %p2429_p7, %p2428_p6 }
  0x2f   :  { %p2431_p9 = pnand %p2430_p8, %p2424_p5 }
  0x31   :  { %2434 = shalt.err (!%p2431_p9)
}
  0x32   :  { %s2468_s1 = smov 128   ;;  %s2469_s24 = smov 8  }
  0x33   :  { %51 = dma.hbm_to_vmem [thread:$0]  %s3530_s3, 256, %s46_s23, [#allocation6], %s2468_s1, %s2468_s1, %s2469_s24  }
  0x34   :  { %2457 = dma.done.wait [#allocation3], 2048  }
  0x35   :  { %2458 = vsyncadd [#allocation3], 4294965248 }
  0x36   :  { %2459 = dma.done.wait [#allocation6], 2304  }
  0x37   :  { %2460 = vsyncadd [#allocation6], 4294964992  ;;  %v2470_v0 = vmov 0.0   ;;  %v2561_v1 = vld [vmem:[#allocation7] sm:$0xff]  ;;  %v90_v2 = vld [vmem:[#allocation2 + $0x8] sm:$0xff]  ;;  %s2471_s13 = smov 96  }
  0x38   :  { %180 = vmatprep.mubr.f32.mxu0 %v2470_v0  ;;  %516 = vmatprep.mubr.f32.mxu1 %v2470_v0  ;;  %s2472_s14 = smov 64   ;;  %v2565_v3 = vld [vmem:[#allocation2 + $0x18] sm:$0xff]  ;;  %v89_v4 = vld [vmem:[#allocation2] sm:$0xff]  ;;  %v2567_v5 = vld [vmem:[#allocation2 + $0x10] sm:$0xff]  ;;  %v2473_v19 = vmov 0   ;;  %vm111_vm0 = vcmask 261120  }
  0x39   :  { %107 = vrot.lane.b32.xlu0 %v2561_v1, %s2471_s13  ;;  %274 = vrot.lane.b32.xlu1 %v2561_v1, %s2472_s14  ;;  %v2569_v6 = vld [vmem:[#allocation7 + $0x8] sm:$0xff]  ;;  %v2105_v7 = vpack.c.bf16 %v2565_v3, %v90_v2  ;;  %v2107_v8 = vpack.c.bf16 %v2567_v5, %v89_v4  ;;  %v96_v10 = vld [vmem:[#allocation2 + $0x38] sm:$0xff]  ;;  %v2576_v12 = vld [vmem:[#allocation2 + $0x20] sm:$0xff]  ;;  %vm385_vm5 = vcmask 130048  }
  0x3a   :  { %v2573_v9 = vld [vmem:[#allocation2 + $0x28] sm:$0xff]  ;;  %v95_v13 = vld [vmem:[#allocation2 + $0x30] sm:$0xff]  ;;  %v2584_v15 = vld [vmem:[%s3527_s0 + $0x18] sm:$0xff]  ;;  %2191 = vset.pattern.permute.xlu0 %v2473_v19  ;;  %2192 = vset.pattern.permute.xlu1 %v2473_v19 }
  0x3b   :  { %v2109_v11 = vpack.c.bf16 %v96_v10, %v2573_v9  ;;  %2106 = vmatprep.subr.bf16.mxu0 %v2105_v7  ;;  %v82_v14 = vld [vmem:[%s3527_s0 + $0x8] sm:$0xff]  ;;  %v2111_v16 = vpack.c.bf16 %v95_v13, %v2576_v12  ;;  %v79_v18 = vld [vmem:[%s3532_s5] sm:$0xff]  ;;  %v2602_v22 = vld [vmem:[%s3527_s0 + $0x10] sm:$0xff] }
  0x3c   :  { %2108 = vmatpush1.bf16.msra.mxu0 %v2107_v8  ;;  %v2113_v17 = vpack.c.bf16 %v2584_v15, %v82_v14  ;;  %v80_v20 = vld [vmem:[%s3532_s5 + $0x8] sm:$0xff]  ;;  %v81_v21 = vld [vmem:[%s3527_s0] sm:$0xff]  ;;  %v2612_v24 = vld [vmem:[%s3527_s0 + $0x38] sm:$0xff] }
  0x3d   :  { %109 = vrot.lane.b32.xlu0 %v2569_v6, %s2471_s13  ;;  %276 = vrot.lane.b32.xlu1 %v2569_v6, %s2472_s14  ;;  %v2607_v23 = vld [vmem:[%s3527_s0 + $0x28] sm:$0xff]  ;;  %v2115_v25 = vpack.c.bf16 %v2602_v22, %v81_v21  ;;  %v2620_v27 = vld [vmem:[%s3527_s0 + $0x20] sm:$0xff]  ;;  %v100_v31 = vld [vmem:[#allocation5 + $0x18] sm:$0xff] }
  0x3e   :  { %2110 = vmatprep.subr.bf16.mxu0 %v2109_v11  ;;  %v2117_v26 = vpack.c.bf16 %v2612_v24, %v2607_v23  ;;  %v2625_v28 = vld [vmem:[%s3527_s0 + $0x30] sm:$0xff]  ;;  %v98_v30 = vld [vmem:[#allocation5 + $0x8] sm:$0xff]  ;;  %v97_v34 = vld [vmem:[#allocation5] sm:$0xff] }
  0x3f   :  { %v2119_v32 = vpack.c.bf16 %v2625_v28, %v2620_v27  ;;  %v2121_v33 = vpack.c.bf16 %v100_v31, %v98_v30  ;;  %v99_v35 = vld [vmem:[#allocation5 + $0x10] sm:$0xff]  ;;  %v102_v37 = vld [vmem:[#allocation5 + $0x28] sm:$0xff]  ;;  %v104_v38 = vld [vmem:[#allocation5 + $0x38] sm:$0xff] }
  0x40   :  { %2112 = vmatpush1.bf16.msra.mxu0 %v2111_v16  ;;  %v2123_v39 = vpack.c.bf16 %v99_v35, %v97_v34  ;;  %v2125_v40 = vpack.c.bf16 %v104_v38, %v102_v37  ;;  %v101_v41 = vld [vmem:[#allocation5 + $0x20] sm:$0xff]  ;;  %v103_v42 = vld [vmem:[#allocation5 + $0x30] sm:$0xff]  ;;  %v1082_v56 = vld [vmem:[#allocation2 + $0x48] sm:$0xff] }
  0x41   :  { %369 = vperm.xlu0 %2191, %v79_v18   ;;  %2114 = vmatprep.subr.bf16.mxu0 %v2113_v17  ;;  %v2127_v43 = vpack.c.bf16 %v103_v42, %v101_v41  ;;  %v1084_v57 = vld [vmem:[#allocation2 + $0x58] sm:$0xff]  ;;  %v1081_v4 = vld [vmem:[#allocation2 + $0x40] sm:$0xff]  ;;  %v1083_v7 = vld [vmem:[#allocation2 + $0x50] sm:$0xff] }
  0x42   :  { %374 = vperm.xlu1 %2192, %v80_v20   ;;  %v2133_v2 = vpack.c.bf16 %v1084_v57, %v1082_v56  ;;  %v1086_v8 = vld [vmem:[#allocation2 + $0x68] sm:$0xff]  ;;  %v1088_v10 = vld [vmem:[#allocation2 + $0x78] sm:$0xff]  ;;  %v2666_v11 = vld [vmem:[%s3531_s4] sm:$0xff]  ;;  %v2135_v14 = vpack.c.bf16 %v1083_v7, %v1081_v4 }
  0x43   :  { %v72_v13 = vld [vmem:[%s3531_s4 + $0x28] sm:$0xff]  ;;  %v2137_v16 = vpack.c.bf16 %v1088_v10, %v1086_v8  ;;  %v1085_v17 = vld [vmem:[#allocation2 + $0x60] sm:$0xff]  ;;  %v1087_v18 = vld [vmem:[#allocation2 + $0x70] sm:$0xff] }
  0x44   :  { %v2056_v19 = vld [vmem:[%s3527_s0 + $0x48] sm:$0xff]  ;;  %v2058_v20 = vld [vmem:[%s3527_s0 + $0x58] sm:$0xff]  ;;  %v69_v31 = vld [vmem:[%s3531_s4 + $0x10] sm:$0xff] }
  0x45   :  { %v2685_v21 = vld [vmem:[%s3531_s4 + $0x8] sm:$0xff]  ;;  %v2141_v30 = vpack.c.bf16 %v2058_v20, %v2056_v19  ;;  %v75_v34 = vld [vmem:[%s3531_s4 + $0x40] sm:$0xff]  ;;  %v2062_v41 = vld [vmem:[%s3527_s0 + $0x78] sm:$0xff] }
  0x46   :  { %v71_v35 = vld [vmem:[%s3531_s4 + $0x20] sm:$0xff]  ;;  %v76_v37 = vld [vmem:[%s3531_s4 + $0x48] sm:$0xff]  ;;  %v77_v42 = vld [vmem:[%s3531_s4 + $0x50] sm:$0xff] }
  0x47   :  { %v2055_v38 = vld [vmem:[%s3527_s0 + $0x40] sm:$0xff]  ;;  %v1092_v57 = vld [vmem:[#allocation5 + $0x50] sm:$0xff] }
  0x48   :  { %v1090_v56 = vld [vmem:[#allocation5 + $0x40] sm:$0xff] }
  0xab   :  { %v2627_v29 = vpop.permute.xlu0 %107  ;;  %v2642_v44 = vpop.permute.xlu1 %274 }
  0xac   :  { %2013 = vmatmul.mubr.msk.f32.vlgmr.msra.gmra.mrb[0].mxu0 %vm111_vm0, %v2627_v29 }
  0xad   :  { %2116 = vmatpush1.bf16.msra.mxu0 %v2115_v25  ;;  %186 = vmatprep.mubr.f32.mxu0 %v2470_v0  ;;  %v73_v25 = vld [vmem:[%s3531_s4 + $0x30] sm:$0xff] }
  0xae   :  { %2118 = vmatprep.subr.bf16.mxu0 %v2117_v26  ;;  %v2139_v26 = vpack.c.bf16 %v1087_v18, %v1085_v17 }
  0xaf   :  { %v2634_v36 = vpop.permute.xlu0 %109  ;;  %v2649_v45 = vpop.permute.xlu1 %276 }
  0xb0   :  { %2014 = vmatmul.mubr.msk.f32.gmra.mrb[2].mxu0 %vm111_vm0, %v2634_v36 }
  0xb1   :  { %2120 = vmatpush1.bf16.msra.mxu0 %v2119_v32  ;;  %261 = vmatprep.mubr.f32.mxu0 %v2470_v0  ;;  %v74_v32 = vld [vmem:[%s3531_s4 + $0x38] sm:$0xff] }
  0xb2   :  { %2122 = vmatprep.subr.bf16.mxu0 %v2121_v33  ;;  %v70_v33 = vld [vmem:[%s3531_s4 + $0x18] sm:$0xff] }
  0xb4   :  { %2015 = vmatmul.mubr.msk.f32.vlgmr.msra.gmra.mrb[0].mxu0 %vm111_vm0, %v2561_v1 }
  0xb5   :  { %2124 = vmatpush1.bf16.msra.mxu0 %v2123_v39  ;;  %267 = vmatprep.mubr.f32.mxu0 %v2470_v0  ;;  %v2057_v39 = vld [vmem:[%s3527_s0 + $0x50] sm:$0xff] }
  0xb6   :  { %2126 = vmatprep.subr.bf16.mxu0 %v2125_v40  ;;  %v2060_v40 = vld [vmem:[%s3527_s0 + $0x68] sm:$0xff] }
  0xb8   :  { %2016 = vmatmul.mubr.msk.f32.gmra.mrb[2].mxu0 %vm111_vm0, %v2569_v6 }
  0xb9   :  { %2128 = vmatpush1.bf16.msra.mxu0 %v2127_v43  ;;  %346 = vmatprep.mubr.f32.mxu0 %v2470_v0  ;;  %v2143_v43 = vpack.c.bf16 %v2057_v39, %v2055_v38 }
  0xbc   :  { %2017 = vmatmul.mubr.msk.f32.vlgmr.msra.gmra.mrb[0].mxu0 %vm111_vm0, %v2642_v44 }
  0xbd   :  { %352 = vmatprep.mubr.f32.mxu0 %v2470_v0 }
  0xc0   :  { %2018 = vmatmul.mubr.msk.f32.gmra.mrb[2].mxu0 %vm111_vm0, %v2649_v45  ;;  %v2655_v47 = vpop.permute.xlu0 %369 }
  0xc1   :  { %486 = vmatprep.mubr.f32.mxu0 %v2470_v0  ;;  %v2657_v49 = vpop.permute.xlu1 %374 }
 0x18f   :  { %v348_v46 = vpop.f32.mrb[0].mxu0 }
 0x190   :  { %v350_v48 = vpop.f32.mrb[1].mxu0  ;;  %v377_v50 = vmul.f32 %v2655_v47, %v348_v46  ;;  %vm363_vm1 = vcmp.gt.f32.partialorder %v348_v46, 0.0 }
 0x191   :  { %v378_v51 = vmul.f32 %v2655_v47, %v350_v48  ;;  %vm364_vm2 = vcmp.gt.f32.partialorder %v350_v48, 0.0 }
 0x192   :  { %v381_v58 = vsel %vm363_vm1, %v348_v46, %v377_v50  ;;  %v2145_v46 = vpack.c.bf16 %v2062_v41, %v2060_v40  ;;  %v2061_v50 = vld [vmem:[%s3527_s0 + $0x70] sm:$0xff] }
 0x193   :  { %v354_v52 = vpop.f32.mrb[2].mxu0  ;;  %v382_v60 = vsel %vm364_vm2, %v350_v48, %v378_v51  ;;  %v2059_v48 = vld [vmem:[%s3527_s0 + $0x60] sm:$0xff]  ;;  %v1091_v51 = vld [vmem:[#allocation5 + $0x48] sm:$0xff] }
 0x194   :  { %vm365_vm3 = vcmp.gt.f32.partialorder %v354_v52, 0.0  ;;  %v379_v53 = vmul.f32 %v2657_v49, %v354_v52  ;;  %v356_v54 = vpop.f32.mrb[3].mxu0 }
 0x195   :  { %vm366_vm4 = vcmp.gt.f32.partialorder %v356_v54, 0.0  ;;  %v380_v55 = vmul.f32 %v2657_v49, %v356_v54 }
 0x196   :  { %v383_v59 = vsel %vm365_vm3, %v354_v52, %v379_v53  ;;  %v1093_v52 = vld [vmem:[#allocation5 + $0x58] sm:$0xff] }
 0x197   :  { %v2131_v61 = vpack.c.bf16 %v383_v59, %v381_v58  ;;  %v384_v62 = vsel %vm366_vm4, %v356_v54, %v380_v55  ;;  %v78_v53 = vld [vmem:[%s3531_s4 + $0x58] sm:$0xff]  ;;  %v2147_v54 = vpack.c.bf16 %v2061_v50, %v2059_v48  ;;  %v2149_v55 = vpack.c.bf16 %v1093_v52, %v1091_v51  ;;  %v1095_v58 = vld [vmem:[#allocation5 + $0x68] sm:$0xff] }
 0x198   :  { %v2129_v63 = vpack.c.bf16 %v384_v62, %v382_v60  ;;  %v1097_v59 = vld [vmem:[#allocation5 + $0x78] sm:$0xff]  ;;  %v1096_v62 = vld [vmem:[#allocation5 + $0x70] sm:$0xff] }
 0x199   :  { %v2153_v60 = vpack.c.bf16 %v1097_v59, %v1095_v58 }
 0x19a   :  { %2130 = vmatprep.subr.bf16.mxu0 %v2129_v63  ;;  %2161 = vmatprep.subr.bf16.mxu1 %v2129_v63 }
 0x19b   :  { %2132 = vmatpush1.bf16.msra.mxu0 %v2131_v61  ;;  %2162 = vmatpush1.bf16.msra.mxu1 %v2131_v61  ;;  %v1094_v61 = vld [vmem:[#allocation5 + $0x60] sm:$0xff] }
 0x19c   :  { %2134 = vmatprep.subr.bf16.mxu0 %v2133_v2  ;;  %v2155_v63 = vpack.c.bf16 %v1096_v62, %v1094_v61 }
 0x19e   :  { %2019 = vmatmul.mubr.msk.f32.vlgmr.msra.gmra.mrb[4].mxu0 %vm385_vm5, %v2666_v11  ;;  %2024 = vmatmul.mubr.msk.f32.vlgmr.msra.gmra.mrb[0].mxu1 %vm385_vm5, %v72_v13 }
 0x19f   :  { %492 = vmatprep.mubr.f32.mxu0 %v2470_v0  ;;  %522 = vmatprep.mubr.f32.mxu1 %v2470_v0 }
 0x1a0   :  { %2136 = vmatpush1.bf16.msra.mxu0 %v2135_v14 }
 0x1a1   :  { %2138 = vmatprep.subr.bf16.mxu0 %v2137_v16 }
 0x1a2   :  { %2020 = vmatmul.mubr.msk.f32.gmra.mrb[6].mxu0 %vm385_vm5, %v2685_v21  ;;  %2025 = vmatmul.mubr.msk.f32.gmra.mrb[2].mxu1 %vm385_vm5, %v73_v25 }
 0x1a3   :  { %498 = vmatprep.mubr.f32.mxu0 %v2470_v0  ;;  %528 = vmatprep.mubr.f32.mxu1 %v2470_v0 }
 0x1a4   :  { %2140 = vmatpush1.bf16.msra.mxu0 %v2139_v26 }
 0x1a5   :  { %2142 = vmatprep.subr.bf16.mxu0 %v2141_v30 }
 0x1a6   :  { %2021 = vmatmul.mubr.msk.f32.gmra.mrb[8].mxu0 %vm385_vm5, %v69_v31  ;;  %2026 = vmatmul.mubr.msk.f32.gmra.mrb[4].mxu1 %vm385_vm5, %v74_v32 }
 0x1a7   :  { %504 = vmatprep.mubr.f32.mxu0 %v2470_v0  ;;  %534 = vmatprep.mubr.f32.mxu1 %v2470_v0 }
 0x1aa   :  { %2022 = vmatmul.mubr.msk.f32.gmra.mrb[10].mxu0 %vm385_vm5, %v70_v33  ;;  %2027 = vmatmul.mubr.msk.f32.gmra.mrb[6].mxu1 %vm385_vm5, %v75_v34 }
 0x1ab   :  { %510 = vmatprep.mubr.f32.mxu0 %v2470_v0  ;;  %540 = vmatprep.mubr.f32.mxu1 %v2470_v0 }
 0x1ae   :  { %2023 = vmatmul.mubr.msk.f32.gmra.mrb[12].mxu0 %vm385_vm5, %v71_v35  ;;  %2028 = vmatmul.mubr.msk.f32.gmra.mrb[8].mxu1 %vm385_vm5, %v76_v37 }
 0x1af   :  { %546 = vmatprep.mubr.f32.mxu1 %v2470_v0  ;;  %1162 = vmatprep.mubr.f32.mxu0 %v2470_v0 }
 0x1b2   :  { %2029 = vmatmul.mubr.msk.f32.gmra.mrb[10].mxu1 %vm385_vm5, %v77_v42  ;;  %2063 = vmatmul.mubr.msk.f32.vlgmr.msra.gmra.mrb[14].mxu0 %vm111_vm0, %v2627_v29  ;;  %v2151_v29 = vpack.c.bf16 %v1092_v57, %v1090_v56 }
 0x1b3   :  { %2144 = vmatpush1.bf16.msra.mxu0 %v2143_v43  ;;  %552 = vmatprep.mubr.f32.mxu1 %v2470_v0 }
 0x1b4   :  { %1168 = vmatprep.mubr.f32.mxu0 %v2470_v0  ;;  %2146 = vmatprep.subr.bf16.mxu0 %v2145_v46 }
 0x1b6   :  { %2030 = vmatmul.mubr.msk.f32.gmra.mrb[12].mxu1 %vm385_vm5, %v78_v53  ;;  %2064 = vmatmul.mubr.msk.f32.gmra.mrb[16].mxu0 %vm111_vm0, %v2634_v36 }
 0x1b7   :  { %2148 = vmatpush1.bf16.msra.mxu0 %v2147_v54  ;;  %1239 = vmatprep.mubr.f32.mxu0 %v2470_v0 }
 0x1b8   :  { %2150 = vmatprep.subr.bf16.mxu0 %v2149_v55  ;;  %1409 = vmatprep.mubr.f32.mxu1 %v2470_v0 }
 0x1ba   :  { %2065 = vmatmul.mubr.msk.f32.vlgmr.msra.gmra.mrb[14].mxu0 %vm111_vm0, %v2561_v1 }
 0x1bb   :  { %2152 = vmatpush1.bf16.msra.mxu0 %v2151_v29  ;;  %1245 = vmatprep.mubr.f32.mxu0 %v2470_v0 }
 0x1bc   :  { %2154 = vmatprep.subr.bf16.mxu0 %v2153_v60 }
 0x1be   :  { %2066 = vmatmul.mubr.msk.f32.gmra.mrb[16].mxu0 %vm111_vm0, %v2569_v6 }
 0x1bf   :  { %2156 = vmatpush1.bf16.msra.mxu0 %v2155_v63  ;;  %1316 = vmatprep.mubr.f32.mxu0 %v2470_v0 }
 0x1c2   :  { %2067 = vmatmul.mubr.msk.f32.vlgmr.msra.gmra.mrb[14].mxu0 %vm111_vm0, %v2642_v44 }
 0x1c3   :  { %1322 = vmatprep.mubr.f32.mxu0 %v2470_v0 }
 0x1c6   :  { %2068 = vmatmul.mubr.msk.f32.gmra.mrb[16].mxu0 %vm111_vm0, %v2649_v45 }
 0x271   :  { %v488_v1 = vpop.f32.mrb[4].mxu0  ;;  %v518_v36 = vpop.f32.mrb[0].mxu1 }
 0x272   :  { %v559_v2 = vmul.f32 0.5, %v488_v1  ;;  %v490_v4 = vpop.f32.mrb[5].mxu0  ;;  %v569_v7 = vmul.f32 0.5, %v518_v36  ;;  %v520_v8 = vpop.f32.mrb[1].mxu1 }
 0x273   :  { %v560_v10 = vmul.f32 0.5, %v490_v4  ;;  %v570_v13 = vmul.f32 0.5, %v520_v8 }
 0x274   :  { %2193 = vtanh.f32 %v559_v2 }
 0x275   :  { %2195 = vtanh.f32 %v560_v10  ;;  %v494_v6 = vpop.f32.mrb[6].mxu0  ;;  %v524_v14 = vpop.f32.mrb[2].mxu1 }
 0x276   :  { %v561_v16 = vmul.f32 0.5, %v494_v6  ;;  %2197 = vtanh.f32 %v569_v7  ;;  %v496_v44 = vpop.f32.mrb[7].mxu0  ;;  %v571_v17 = vmul.f32 0.5, %v524_v14  ;;  %v526_v18 = vpop.f32.mrb[3].mxu1 }
 0x277   :  { %v562_v19 = vmul.f32 0.5, %v496_v44  ;;  %2199 = vtanh.f32 %v570_v13  ;;  %v572_v43 = vmul.f32 0.5, %v526_v18 }
 0x278   :  { %2201 = vtanh.f32 %v561_v16 }
 0x279   :  { %2203 = vtanh.f32 %v562_v19  ;;  %v500_v45 = vpop.f32.mrb[8].mxu0  ;;  %v530_v20 = vpop.f32.mrb[4].mxu1 }
 0x27a   :  { %v563_v25 = vmul.f32 0.5, %v500_v45  ;;  %2205 = vtanh.f32 %v571_v17  ;;  %v502_v26 = vpop.f32.mrb[9].mxu0  ;;  %v532_v30 = vpop.f32.mrb[5].mxu1  ;;  %v573_v58 = vmul.f32 0.5, %v530_v20 }
 0x27b   :  { %v564_v62 = vmul.f32 0.5, %v502_v26  ;;  %v574_v13 = vmul.f32 0.5, %v532_v30 }
 0x27c   :  { %2207 = vtanh.f32 %v563_v25 }
 0x27d   :  { %v506_v31 = vpop.f32.mrb[10].mxu0  ;;  %v2770_v32 = vpop.f32.mrb[6].mxu1  ;;  %2209 = vtanh.f32 %v572_v43 }
 0x27e   :  { %v2194_v33 = vpop.eup %2193  ;;  %v2772_v34 = vpop.f32.mrb[11].mxu0  ;;  %v2790_v10 = vmul.f32 0.5, %v506_v31  ;;  %2211 = vtanh.f32 %v564_v62 }
 0x27f   :  { %v2774_v35 = vpop.f32.mrb[7].mxu1  ;;  %v2196_v37 = vpop.eup %2195  ;;  %v607_v38 = vadd.f32 1.0, %v2194_v33  ;;  %2213 = vtanh.f32 %v573_v58  ;;  %v566_v62 = vmul.f32 0.5, %v2772_v34 }
 0x280   :  { %v2198_v39 = vpop.eup %2197  ;;  %v608_v40 = vadd.f32 1.0, %v2196_v37  ;;  %2215 = vtanh.f32 %v574_v13 }
 0x281   :  { %v2200_v41 = vpop.eup %2199  ;;  %v617_v42 = vadd.f32 1.0, %v2198_v39  ;;  %v2776_v46 = vpop.f32.mrb[12].mxu0  ;;  %v631_v55 = vmul.f32 0.5, %v607_v38  ;;  %2217 = vtanh.f32 %v2790_v10 }
 0x282   :  { %v2778_v48 = vpop.f32.mrb[8].mxu1  ;;  %v2202_v50 = vpop.eup %2201  ;;  %v618_v51 = vadd.f32 1.0, %v2200_v41  ;;  %v632_v29 = vmul.f32 0.5, %v608_v40  ;;  %2219 = vtanh.f32 %v566_v62 }
 0x283   :  { %v2780_v52 = vpop.f32.mrb[13].mxu0  ;;  %v2782_v53 = vpop.f32.mrb[9].mxu1  ;;  %v609_v56 = vadd.f32 1.0, %v2202_v50  ;;  %v641_v57 = vmul.f32 0.5, %v617_v42  ;;  %v2794_v14 = vadd.f32 -0.5, %v631_v55 }
 0x284   :  { %v2204_v54 = vpop.eup %2203  ;;  %v642_v61 = vmul.f32 0.5, %v618_v51  ;;  %v2799_v18 = vadd.f32 -0.5, %v632_v29 }
 0x285   :  { %v2206_v59 = vpop.eup %2205  ;;  %v610_v60 = vadd.f32 1.0, %v2204_v54  ;;  %v633_v63 = vmul.f32 0.5, %v609_v56  ;;  %v2784_v1 = vadd.f32 -0.5, %v641_v57  ;;  %v2786_v2 = vpop.f32.mrb[10].mxu1  ;;  %v679_v40 = vmul.f32 0.0013888889, %v2794_v14 }
 0x286   :  { %v619_v36 = vadd.f32 1.0, %v2206_v59  ;;  %v2208_v4 = vpop.eup %2207  ;;  %v2788_v8 = vadd.f32 -0.5, %v642_v61  ;;  %v2792_v6 = vpop.f32.mrb[11].mxu1  ;;  %v680_v50 = vmul.f32 0.0013888889, %v2799_v18  ;;  %v575_v59 = vmul.f32 0.5, %v2770_v32 }
 0x287   :  { %v634_v7 = vmul.f32 0.5, %v610_v60  ;;  %v2796_v16 = vadd.f32 -0.5, %v633_v63  ;;  %v689_v44 = vmul.f32 0.0013888889, %v2784_v1  ;;  %v611_v17 = vadd.f32 1.0, %v2208_v4  ;;  %v2824_v63 = vpop.eup %2209 }
 0x288   :  { %v690_v45 = vmul.f32 0.0013888889, %v2788_v8  ;;  %v643_v20 = vmul.f32 0.5, %v619_v36  ;;  %v703_v36 = vadd.f32 0.008333334, %v679_v40  ;;  %v576_v40 = vmul.f32 0.5, %v2774_v35 }
 0x289   :  { %v2801_v19 = vadd.f32 -0.5, %v634_v7  ;;  %v681_v25 = vmul.f32 0.0013888889, %v2796_v16  ;;  %v713_v26 = vadd.f32 0.008333334, %v689_v44  ;;  %v635_v30 = vmul.f32 0.5, %v611_v17 }
 0x28a   :  { %v2805_v31 = vpop.f32.mrb[12].mxu1  ;;  %v714_v37 = vadd.f32 0.008333334, %v690_v45  ;;  %v2808_v38 = vadd.f32 -0.5, %v643_v20  ;;  %v704_v17 = vadd.f32 0.008333334, %v680_v50  ;;  %2221 = vtanh.f32 %v575_v59 }
 0x28b   :  { %v682_v33 = vmul.f32 0.0013888889, %v2801_v19  ;;  %v2810_v39 = vpop.f32.mrb[13].mxu1  ;;  %v705_v41 = vadd.f32 0.008333334, %v681_v25  ;;  %v737_v42 = vmul.f32 %v2784_v1, %v713_v26  ;;  %v2814_v43 = vadd.f32 -0.5, %v635_v30 }
 0x28c   :  { %v738_v54 = vmul.f32 %v2788_v8, %v714_v37  ;;  %v691_v55 = vmul.f32 0.0013888889, %v2808_v38  ;;  %2223 = vtanh.f32 %v576_v40 }
 0x28d   :  { %v706_v51 = vadd.f32 0.008333334, %v682_v33  ;;  %v729_v56 = vmul.f32 %v2796_v16, %v705_v41  ;;  %v761_v57 = vadd.f32 0.041666668, %v737_v42  ;;  %v683_v58 = vmul.f32 0.0013888889, %v2814_v43  ;;  %v2833_v41 = vpop.eup %2211 }
 0x28e   :  { %v762_v60 = vadd.f32 0.041666668, %v738_v54  ;;  %v715_v61 = vadd.f32 0.008333334, %v691_v55  ;;  %v727_v42 = vmul.f32 %v2794_v14, %v703_v36  ;;  %v2837_v55 = vpop.eup %2213 }
 0x28f   :  { %v730_v29 = vmul.f32 %v2801_v19, %v706_v51  ;;  %v753_v4 = vadd.f32 0.041666668, %v729_v56  ;;  %v785_v7 = vmul.f32 %v2784_v1, %v761_v57  ;;  %v707_v44 = vadd.f32 0.008333334, %v683_v58 }
 0x290   :  { %v786_v20 = vmul.f32 %v2788_v8, %v762_v60  ;;  %v739_v25 = vmul.f32 %v2808_v38, %v715_v61  ;;  %v728_v56 = vmul.f32 %v2799_v18, %v704_v17  ;;  %v751_v17 = vadd.f32 0.041666668, %v727_v42 }
 0x291   :  { %v754_v45 = vadd.f32 0.041666668, %v730_v29  ;;  %v777_v32 = vmul.f32 %v2796_v16, %v753_v4  ;;  %v809_v26 = vadd.f32 0.16666667, %v785_v7  ;;  %v731_v30 = vmul.f32 %v2814_v43, %v707_v44 }
 0x292   :  { %v810_v33 = vadd.f32 0.16666667, %v786_v20  ;;  %v763_v37 = vadd.f32 0.041666668, %v739_v25 }
 0x293   :  { %v778_v34 = vmul.f32 %v2801_v19, %v754_v45  ;;  %v801_v50 = vadd.f32 0.16666667, %v777_v32  ;;  %v833_v51 = vmul.f32 %v2784_v1, %v809_v26  ;;  %v755_v54 = vadd.f32 0.041666668, %v731_v30 }
 0x294   :  { %v834_v13 = vmul.f32 %v2788_v8, %v810_v33  ;;  %v787_v58 = vmul.f32 %v2808_v38, %v763_v37  ;;  %v752_v32 = vadd.f32 0.041666668, %v728_v56 }
 0x295   :  { %v802_v57 = vadd.f32 0.16666667, %v778_v34  ;;  %v825_v29 = vmul.f32 %v2796_v16, %v801_v50  ;;  %v857_v35 = vadd.f32 0.5, %v833_v51  ;;  %v779_v60 = vmul.f32 %v2814_v43, %v755_v54  ;;  %v2845_v61 = vpop.f32.mrb[14].mxu0 }
 0x296   :  { %v858_v4 = vadd.f32 0.5, %v834_v13  ;;  %v811_v7 = vadd.f32 0.16666667, %v787_v58  ;;  %v2848_v44 = vpop.f32.mrb[15].mxu0  ;;  %v2859_v54 = vmul.f32 0.5, %v2776_v46  ;;  %v775_v13 = vmul.f32 %v2794_v14, %v751_v17 }
 0x297   :  { %v826_v36 = vmul.f32 %v2801_v19, %v802_v57  ;;  %v849_v45 = vadd.f32 0.5, %v825_v29  ;;  %v881_v20 = vmul.f32 %v2784_v1, %v857_v35  ;;  %v803_v25 = vadd.f32 0.16666667, %v779_v60  ;;  %v2216_v57 = vpop.eup %2215 }
 0x298   :  { %v882_v30 = vmul.f32 %v2788_v8, %v858_v4  ;;  %v835_v10 = vmul.f32 %v2808_v38, %v811_v7  ;;  %v776_v59 = vmul.f32 %v2799_v18, %v752_v32  ;;  %2225 = vtanh.f32 %v2859_v54 }
 0x299   :  { %v850_v26 = vadd.f32 0.5, %v826_v36  ;;  %v873_v34 = vmul.f32 %v2796_v16, %v849_v45  ;;  %v905_v33 = vadd.f32 1.0, %v881_v20  ;;  %v827_v37 = vmul.f32 %v2814_v43, %v803_v25  ;;  %v2855_v62 = vpop.f32.mrb[16].mxu0 }
 0x29a   :  { %v906_v50 = vadd.f32 1.0, %v882_v30  ;;  %v859_v51 = vadd.f32 0.5, %v835_v10  ;;  %v2861_v56 = vpop.f32.mrb[17].mxu0  ;;  %v2872_v30 = vadd.f32 0.16666667, %v775_v13  ;;  %vm1333_vm6 = vcmp.gt.f32.partialorder %v2845_v61, 0.0 }
 0x29b   :  { %v874_v42 = vmul.f32 %v2801_v19, %v850_v26  ;;  %v897_v58 = vadd.f32 1.0, %v873_v34  ;;  %v929_v29 = vmul.f32 %v2784_v1, %v905_v33  ;;  %v851_v35 = vadd.f32 0.5, %v827_v37  ;;  %v2218_v26 = vpop.eup %2217 }
 0x29c   :  { %v930_v36 = vmul.f32 %v2788_v8, %v906_v50  ;;  %v883_v4 = vmul.f32 %v2808_v38, %v859_v51  ;;  %v620_v1 = vadd.f32 1.0, %v2824_v63  ;;  %v2220_v34 = vpop.eup %2219  ;;  %v2874_v33 = vadd.f32 0.16666667, %v776_v59 }
 0x29d   :  { %v898_v60 = vadd.f32 1.0, %v874_v42  ;;  %v921_v7 = vmul.f32 %v2796_v16, %v897_v58  ;;  %v953_v46 = vadd.f32 1.0, %v929_v29  ;;  %v875_v45 = vmul.f32 %v2814_v43, %v851_v35  ;;  %v2222_v35 = vpop.eup %2221 }
 0x29e   :  { %v954_v17 = vadd.f32 1.0, %v930_v36  ;;  %v907_v25 = vadd.f32 1.0, %v883_v4  ;;  %v612_v63 = vadd.f32 1.0, %v2833_v41  ;;  %v644_v29 = vmul.f32 0.5, %v620_v1 }
 0x29f   :  { %v922_v20 = vmul.f32 %v2801_v19, %v898_v60  ;;  %v945_v32 = vadd.f32 1.0, %v921_v7  ;;  %v977_v10 = vmul.f32 1.6487212, %v953_v46  ;;  %v899_v8 = vadd.f32 1.0, %v875_v45 }
 0x2a0   :  { %v978_v37 = vmul.f32 1.6487212, %v954_v17  ;;  %v931_v42 = vmul.f32 %v2808_v38, %v907_v25  ;;  %v636_v4 = vmul.f32 0.5, %v612_v63  ;;  %v613_v45 = vadd.f32 1.0, %v2218_v26 }
 0x2a1   :  { %v946_v16 = vadd.f32 1.0, %v922_v20  ;;  %v969_v40 = vmul.f32 1.6487212, %v945_v32  ;;  %v1017_v19 = vmul.f32 %v977_v10, %v2567_v5  ;;  %v923_v50 = vmul.f32 %v2814_v43, %v899_v8 }
 0x2a2   :  { %v1018_v13 = vmul.f32 %v978_v37, %v2565_v3  ;;  %v955_v58 = vadd.f32 1.0, %v931_v42  ;;  %v2887_v43 = vadd.f32 -0.5, %v644_v29  ;;  %v2891_v3 = vadd.f32 -0.5, %v636_v4 }
 0x2a3   :  { %v970_v51 = vmul.f32 1.6487212, %v946_v16  ;;  %v1009_v59 = vmul.f32 %v969_v40, %v2602_v22  ;;  %v2882_v60 = vadd.f32 %v977_v10, %v969_v40  ;;  %v947_v36 = vadd.f32 1.0, %v923_v50 }
 0x2a4   :  { %v979_v5 = vmul.f32 1.6487212, %v955_v58  ;;  %v692_v17 = vmul.f32 0.0013888889, %v2887_v43  ;;  %v621_v25 = vadd.f32 1.0, %v2837_v55  ;;  %v637_v8 = vmul.f32 0.5, %v613_v45 }
 0x2a5   :  { %v1010_v38 = vmul.f32 %v970_v51, %v2584_v15  ;;  %v2885_v7 = vadd.f32 %v978_v37, %v970_v51  ;;  %v2889_v41 = vadd.f32 %v1017_v19, %v1009_v59  ;;  %v971_v46 = vmul.f32 1.6487212, %v947_v36  ;;  %v2224_v15 = vpop.eup %2223 }
 0x2a6   :  { %v1019_v22 = vmul.f32 %v979_v5, %v2576_v12  ;;  %v684_v10 = vmul.f32 0.0013888889, %v2891_v3  ;;  %v716_v16 = vadd.f32 0.008333334, %v692_v17  ;;  %v645_v37 = vmul.f32 0.5, %v621_v25 }
 0x2a7   :  { %v2893_v20 = vadd.f32 %v1018_v13, %v1010_v38  ;;  %v1011_v1 = vmul.f32 %v971_v46, %v2620_v27  ;;  %v2899_v32 = vadd.f32 %v979_v5, %v971_v46  ;;  %v614_v42 = vadd.f32 1.0, %v2220_v34 }
 0x2a8   :  { %v622_v26 = vadd.f32 1.0, %v2216_v57  ;;  %v708_v19 = vadd.f32 0.008333334, %v684_v10  ;;  %v2904_v12 = vadd.f32 -0.5, %v637_v8  ;;  %v623_v50 = vadd.f32 1.0, %v2222_v35 }
 0x2a9   :  { %v2902_v40 = vadd.f32 %v1019_v22, %v1011_v1  ;;  %v740_v55 = vmul.f32 %v2887_v43, %v716_v16  ;;  %v2907_v63 = vadd.f32 -0.5, %v645_v37  ;;  %v638_v27 = vmul.f32 0.5, %v614_v42 }
 0x2aa   :  { %v646_v51 = vmul.f32 0.5, %v622_v26  ;;  %v732_v13 = vmul.f32 %v2891_v3, %v708_v19  ;;  %v685_v58 = vmul.f32 0.0013888889, %v2904_v12  ;;  %v647_v29 = vmul.f32 0.5, %v623_v50 }
 0x2ab   :  { %v624_v59 = vadd.f32 1.0, %v2224_v15  ;;  %v764_v34 = vadd.f32 0.041666668, %v740_v55  ;;  %v693_v57 = vmul.f32 0.0013888889, %v2907_v63  ;;  %v2912_v36 = vadd.f32 -0.5, %v638_v27 }
 0x2ac   :  { %v2914_v4 = vadd.f32 -0.5, %v646_v51  ;;  %v756_v35 = vadd.f32 0.041666668, %v732_v13  ;;  %v709_v38 = vadd.f32 0.008333334, %v685_v58  ;;  %v2916_v5 = vadd.f32 -0.5, %v647_v29 }
 0x2ad   :  { %v648_v46 = vmul.f32 0.5, %v624_v59  ;;  %v788_v45 = vmul.f32 %v2887_v43, %v764_v34  ;;  %v717_v22 = vadd.f32 0.008333334, %v693_v57  ;;  %v686_v17 = vmul.f32 0.0013888889, %v2912_v36 }
 0x2ae   :  { %v694_v25 = vmul.f32 0.0013888889, %v2914_v4  ;;  %v780_v15 = vmul.f32 %v2891_v3, %v756_v35  ;;  %v733_v1 = vmul.f32 %v2904_v12, %v709_v38  ;;  %v695_v10 = vmul.f32 0.0013888889, %v2916_v5 }
 0x2af   :  { %v2924_v8 = vadd.f32 -0.5, %v648_v46  ;;  %v812_v16 = vadd.f32 0.16666667, %v788_v45  ;;  %v741_v37 = vmul.f32 %v2907_v63, %v717_v22  ;;  %v710_v42 = vadd.f32 0.008333334, %v686_v17 }
 0x2b0   :  { %v718_v26 = vadd.f32 0.008333334, %v694_v25  ;;  %v804_v19 = vadd.f32 0.16666667, %v780_v15  ;;  %v757_v50 = vadd.f32 0.041666668, %v733_v1  ;;  %v823_v45 = vmul.f32 %v2794_v14, %v2872_v30 }
 0x2b1   :  { %v719_v55 = vadd.f32 0.008333334, %v695_v10  ;;  %v836_v27 = vmul.f32 %v2887_v43, %v812_v16  ;;  %v765_v51 = vadd.f32 0.041666668, %v741_v37  ;;  %v734_v13 = vmul.f32 %v2912_v36, %v710_v42 }
 0x2b2   :  { %v742_v58 = vmul.f32 %v2914_v4, %v718_v26  ;;  %v828_v29 = vmul.f32 %v2891_v3, %v804_v19  ;;  %v781_v59 = vmul.f32 %v2904_v12, %v757_v50  ;;  %v696_v57 = vmul.f32 0.0013888889, %v2924_v8 }
 0x2b3   :  { %v743_v34 = vmul.f32 %v2916_v5, %v719_v55  ;;  %v860_v35 = vadd.f32 0.5, %v836_v27  ;;  %v789_v38 = vmul.f32 %v2907_v63, %v765_v51  ;;  %v758_v46 = vadd.f32 0.041666668, %v734_v13 }
 0x2b4   :  { %v766_v54 = vadd.f32 0.041666668, %v742_v58  ;;  %v852_v22 = vadd.f32 0.5, %v828_v29  ;;  %v805_v17 = vadd.f32 0.16666667, %v781_v59  ;;  %v824_v51 = vmul.f32 %v2799_v18, %v2874_v33 }
 0x2b5   :  { %v767_v25 = vadd.f32 0.041666668, %v743_v34  ;;  %v884_v15 = vmul.f32 %v2887_v43, %v860_v35  ;;  %v813_v1 = vadd.f32 0.16666667, %v789_v38  ;;  %v782_v10 = vmul.f32 %v2912_v36, %v758_v46  ;;  %v2226_v46 = vpop.eup %2225 }
 0x2b6   :  { %v790_v16 = vmul.f32 %v2914_v4, %v766_v54  ;;  %v876_v37 = vmul.f32 %v2891_v3, %v852_v22  ;;  %v829_v42 = vmul.f32 %v2904_v12, %v805_v17  ;;  %v720_v19 = vadd.f32 0.008333334, %v696_v57 }
 0x2b7   :  { %v791_v26 = vmul.f32 %v2916_v5, %v767_v25  ;;  %v908_v50 = vadd.f32 1.0, %v884_v15  ;;  %v837_v30 = vmul.f32 %v2907_v63, %v813_v1  ;;  %v806_v55 = vadd.f32 0.16666667, %v782_v10 }
 0x2b8   :  { %v814_v27 = vadd.f32 0.16666667, %v790_v16  ;;  %v900_v13 = vadd.f32 1.0, %v876_v37  ;;  %v853_v58 = vadd.f32 0.5, %v829_v42  ;;  %v847_v57 = vadd.f32 0.5, %v823_v45 }
 0x2b9   :  { %v815_v29 = vadd.f32 0.16666667, %v791_v26  ;;  %v932_v59 = vmul.f32 %v2887_v43, %v908_v50  ;;  %v861_v34 = vadd.f32 0.5, %v837_v30  ;;  %v830_v35 = vmul.f32 %v2912_v36, %v806_v55 }
 0x2ba   :  { %v838_v38 = vmul.f32 %v2914_v4, %v814_v27  ;;  %v924_v54 = vmul.f32 %v2891_v3, %v900_v13  ;;  %v877_v22 = vmul.f32 %v2904_v12, %v853_v58  ;;  %v744_v17 = vmul.f32 %v2924_v8, %v720_v19 }
 0x2bb   :  { %v956_v25 = vadd.f32 1.0, %v932_v59  ;;  %v885_v33 = vmul.f32 %v2907_v63, %v861_v34  ;;  %v854_v15 = vadd.f32 0.5, %v830_v35  ;;  %v848_v10 = vadd.f32 0.5, %v824_v51 }
 0x2bc   :  { %v862_v1 = vadd.f32 0.5, %v838_v38  ;;  %v948_v43 = vadd.f32 1.0, %v924_v54  ;;  %v901_v16 = vadd.f32 1.0, %v877_v22  ;;  %v839_v37 = vmul.f32 %v2916_v5, %v815_v29 }
 0x2bd   :  { %v980_v42 = vmul.f32 1.6487212, %v956_v25  ;;  %v909_v26 = vadd.f32 1.0, %v885_v33  ;;  %v878_v45 = vmul.f32 %v2912_v36, %v854_v15  ;;  %v768_v19 = vadd.f32 0.041666668, %v744_v17 }
 0x2be   :  { %v886_v3 = vmul.f32 %v2914_v4, %v862_v1  ;;  %v972_v50 = vmul.f32 1.6487212, %v948_v43  ;;  %v925_v30 = vmul.f32 %v2904_v12, %v901_v16  ;;  %v615_v55 = vadd.f32 1.0, %v2226_v46  ;;  %v2321_v16 = vld [vmem:[#allocation2 + $0x30] sm:$0xff] }
 0x2bf   :  { %v1020_v27 = vmul.f32 %v980_v42, %v2573_v9  ;;  %v933_v13 = vmul.f32 %v2907_v63, %v909_v26  ;;  %v902_v51 = vadd.f32 1.0, %v878_v45  ;;  %v863_v35 = vadd.f32 0.5, %v839_v37 }
 0x2c0   :  { %v910_v58 = vadd.f32 1.0, %v886_v3  ;;  %v1012_v59 = vmul.f32 %v972_v50, %v2607_v23  ;;  %v2961_v29 = vadd.f32 %v980_v42, %v972_v50  ;;  %v949_v34 = vadd.f32 1.0, %v925_v30 }
 0x2c1   :  { %v871_v38 = vmul.f32 %v2794_v14, %v847_v57  ;;  %v957_v54 = vadd.f32 1.0, %v933_v13  ;;  %v926_v22 = vmul.f32 %v2912_v36, %v902_v51  ;;  %v792_v63 = vmul.f32 %v2924_v8, %v768_v19  ;;  %v2322_v19 = vld [vmem:[#allocation2 + $0x38] sm:$0xff] }
 0x2c2   :  { %v934_v12 = vmul.f32 %v2914_v4, %v910_v58  ;;  %v2966_v46 = vadd.f32 %v1020_v27, %v1012_v59  ;;  %v973_v9 = vmul.f32 1.6487212, %v949_v34  ;;  %v639_v17 = vmul.f32 0.5, %v615_v55 }
 0x2c3   :  { %v872_v25 = vmul.f32 %v2799_v18, %v848_v10  ;;  %v981_v23 = vmul.f32 1.6487212, %v957_v54  ;;  %v950_v33 = vadd.f32 1.0, %v926_v22  ;;  %v887_v57 = vmul.f32 %v2916_v5, %v863_v35 }
 0x2c4   :  { %v958_v15 = vadd.f32 1.0, %v934_v12  ;;  %v1013_v1 = vmul.f32 %v973_v9, %v2625_v28  ;;  %v2972_v43 = vadd.f32 -0.5, %v639_v17  ;;  %v577_v36 = vmul.f32 0.5, %v2778_v48 }
 0x2c5   :  { %v2975_v4 = vadd.f32 %v981_v23, %v973_v9  ;;  %v1021_v37 = vmul.f32 %v2321_v16, %v981_v23  ;;  %v974_v42 = vmul.f32 1.6487212, %v950_v33  ;;  %v895_v45 = vadd.f32 1.0, %v871_v38 }
 0x2c6   :  { %v982_v26 = vmul.f32 1.6487212, %v958_v15  ;;  %v816_v3 = vadd.f32 0.16666667, %v792_v63  ;;  %v687_v10 = vmul.f32 0.0013888889, %v2972_v43  ;;  %2227 = vtanh.f32 %v577_v36 }
 0x2c7   :  { %v2978_v50 = vadd.f32 %v1021_v37, %v1013_v1  ;;  %v1014_v28 = vmul.f32 %v974_v42, %v2612_v24  ;;  %v896_v48 = vadd.f32 1.0, %v872_v25  ;;  %v911_v27 = vadd.f32 1.0, %v887_v57 }
 0x2c8   :  { %v2981_v30 = vadd.f32 %v982_v26, %v974_v42  ;;  %v1022_v55 = vmul.f32 %v2322_v19, %v982_v26  ;;  %v711_v13 = vadd.f32 0.008333334, %v687_v10  ;;  %v568_v51 = vmul.f32 0.5, %v2780_v52 }
 0x2c9   :  { %v578_v59 = vmul.f32 0.5, %v2782_v53  ;;  %v579_v34 = vmul.f32 0.5, %v2786_v2  ;;  %v580_v35 = vmul.f32 0.5, %v2792_v6  ;;  %v919_v38 = vmul.f32 %v2794_v14, %v895_v45 }
 0x2ca   :  { %v2984_v58 = vadd.f32 %v1022_v55, %v1014_v28  ;;  %v735_v24 = vmul.f32 %v2972_v43, %v711_v13  ;;  %2229 = vtanh.f32 %v568_v51  ;;  %v581_v54 = vmul.f32 0.5, %v2805_v31 }
 0x2cb   :  { %v840_v22 = vmul.f32 %v2924_v8, %v816_v3  ;;  %2231 = vtanh.f32 %v578_v59  ;;  %v582_v52 = vmul.f32 0.5, %v2810_v39  ;;  %v1337_v12 = vmul.f32 %v2845_v61, %v2655_v47 }
 0x2cc   :  { %v935_v53 = vmul.f32 %v2916_v5, %v911_v27  ;;  %v759_v2 = vadd.f32 0.041666668, %v735_v24  ;;  %2233 = vtanh.f32 %v579_v34  ;;  %v1338_v6 = vmul.f32 %v2848_v44, %v2655_v47 }
 0x2cd   :  { %2235 = vtanh.f32 %v580_v35  ;;  %vm1335_vm7 = vcmp.gt.f32.partialorder %v2855_v62, 0.0  ;;  %v1339_v14 = vmul.f32 %v2855_v62, %v2657_v49  ;;  %vm1334_vm8 = vcmp.gt.f32.partialorder %v2848_v44, 0.0 }
 0x2ce   :  { %v783_v31 = vmul.f32 %v2972_v43, %v759_v2  ;;  %2237 = vtanh.f32 %v581_v54  ;;  %vm1336_vm9 = vcmp.gt.f32.partialorder %v2861_v56, 0.0  ;;  %v1341_v39 = vsel %vm1333_vm6, %v2845_v61, %v1337_v12 }
 0x2cf   :  { %2239 = vtanh.f32 %v582_v52  ;;  %v1343_v5 = vsel %vm1335_vm7, %v2855_v62, %v1339_v14  ;;  %v1340_v47 = vmul.f32 %v2861_v56, %v2657_v49  ;;  %v864_v63 = vadd.f32 0.5, %v840_v22 }
 0x2d0   :  { %v2228_v9 = vpop.eup %2227  ;;  %v807_v17 = vadd.f32 0.16666667, %v783_v31  ;;  %v2159_v25 = vpack.c.bf16 %v1343_v5, %v1341_v39  ;;  %v1342_v33 = vsel %vm1334_vm8, %v2848_v44, %v1338_v6  ;;  %v943_v1 = vadd.f32 1.0, %v919_v38 }
 0x2d1   :  { %v625_v23 = vadd.f32 1.0, %v2228_v9  ;;  %v1344_v15 = vsel %vm1336_vm9, %v2861_v56, %v1340_v47  ;;  %v920_v57 = vmul.f32 %v2799_v18, %v896_v48  ;;  %v959_v16 = vadd.f32 1.0, %v935_v53 }
 0x2d2   :  { %v831_v36 = vmul.f32 %v2972_v43, %v807_v17  ;;  %v2157_v61 = vpack.c.bf16 %v1344_v15, %v1342_v33  ;;  %v888_v49 = vmul.f32 %v2924_v8, %v864_v63  ;;  %v967_v56 = vmul.f32 1.6487212, %v943_v1  ;;  %v2324_v1 = vld [vmem:[#allocation5] sm:$0xff] }
 0x2d3   :  { %v649_v62 = vmul.f32 0.5, %v625_v23  ;;  %v3017_v10 = vadd.f32 1.0, %v920_v57  ;;  %v983_v55 = vmul.f32 1.6487212, %v959_v16 }
 0x2d4   :  { %v2230_v37 = vpop.eup %2229  ;;  %v855_v42 = vadd.f32 0.5, %v831_v36  ;;  %2158 = vmatprep.subr.bf16.mxu1 %v2157_v61  ;;  %v3021_v59 = vadd.f32 1.0, %v888_v49 }
 0x2d5   :  { %v2232_v26 = vpop.eup %2231  ;;  %v3015_v45 = vadd.f32 -0.5, %v649_v62  ;;  %v616_v3 = vadd.f32 1.0, %v2230_v37  ;;  %2160 = vmatpush1.bf16.msra.mxu1 %v2159_v25  ;;  %v1031_v57 = vmul.f32 %v2324_v1, %v983_v55 }
 0x2d6   :  { %v2234_v44 = vpop.eup %2233  ;;  %v879_v18 = vmul.f32 %v2972_v43, %v855_v42  ;;  %v626_v28 = vadd.f32 1.0, %v2232_v26  ;;  %v2325_v26 = vld [vmem:[#allocation2] sm:$0xff] }
 0x2d7   :  { %v2236_v19 = vpop.eup %2235  ;;  %v697_v48 = vmul.f32 0.0013888889, %v3015_v45  ;;  %v640_v27 = vmul.f32 0.5, %v616_v3  ;;  %v627_v13 = vadd.f32 1.0, %v2234_v44 }
 0x2d8   :  { %v2238_v51 = vpop.eup %2237  ;;  %v903_v34 = vadd.f32 1.0, %v879_v18  ;;  %v650_v35 = vmul.f32 0.5, %v626_v28  ;;  %v628_v38 = vadd.f32 1.0, %v2236_v19  ;;  %2069 = vmatmul.mubr.msk.f32.vlgmr.msra.gmra.mrb[14].mxu1 %vm385_vm5, %v2666_v11  ;;  %v2326_v28 = vld [vmem:[%s3531_s4 + $0x10] sm:$0xff] }
 0x2d9   :  { %v2240_v24 = vpop.eup %2239  ;;  %v721_v54 = vadd.f32 0.008333334, %v697_v48  ;;  %v3025_v22 = vadd.f32 -0.5, %v640_v27  ;;  %v651_v52 = vmul.f32 0.5, %v627_v13  ;;  %v629_v12 = vadd.f32 1.0, %v2238_v51  ;;  %1415 = vmatprep.mubr.f32.mxu1 %v2470_v0 }
 0x2da   :  { %v927_v53 = vmul.f32 %v2972_v43, %v903_v34  ;;  %v3029_v2 = vadd.f32 -0.5, %v650_v35  ;;  %v652_v6 = vmul.f32 0.5, %v628_v38  ;;  %v630_v14 = vadd.f32 1.0, %v2240_v24  ;;  %v2323_v43 = vld [vmem:[%s3527_s0] sm:$0xff] }
 0x2db   :  { %v745_v31 = vmul.f32 %v3015_v45, %v721_v54  ;;  %v688_v39 = vmul.f32 0.0013888889, %v3025_v22  ;;  %v3033_v5 = vadd.f32 -0.5, %v651_v52  ;;  %v653_v11 = vmul.f32 0.5, %v629_v12 }
 0x2dc   :  { %v951_v47 = vadd.f32 1.0, %v927_v53  ;;  %v698_v9 = vmul.f32 0.0013888889, %v3029_v2  ;;  %v3036_v63 = vadd.f32 -0.5, %v652_v6  ;;  %v654_v17 = vmul.f32 0.5, %v630_v14  ;;  %2070 = vmatmul.mubr.msk.f32.gmra.mrb[16].mxu1 %vm385_vm5, %v2685_v21  ;;  %v2327_v14 = vld [vmem:[%s3531_s4 + $0x18] sm:$0xff] }
 0x2dd   :  { %v1007_v25 = vmul.f32 %v2323_v43, %v967_v56  ;;  %v769_v23 = vadd.f32 0.041666668, %v745_v31  ;;  %v712_v33 = vadd.f32 0.008333334, %v688_v39  ;;  %v699_v15 = vmul.f32 0.0013888889, %v3033_v5  ;;  %1421 = vmatprep.mubr.f32.mxu1 %v2470_v0 }
 0x2de   :  { %v975_v36 = vmul.f32 1.6487212, %v951_v47  ;;  %v722_v61 = vadd.f32 0.008333334, %v698_v9  ;;  %v700_v16 = vmul.f32 0.0013888889, %v3036_v63  ;;  %v936_v47 = vmul.f32 %v2924_v8, %v3021_v59 }
 0x2df   :  { %v793_v62 = vmul.f32 %v3015_v45, %v769_v23  ;;  %v736_v21 = vmul.f32 %v3025_v22, %v712_v33  ;;  %v723_v37 = vadd.f32 0.008333334, %v699_v15  ;;  %v3048_v49 = vadd.f32 -0.5, %v653_v11  ;;  %v2328_v8 = vld [vmem:[%s3531_s4 + $0x20] sm:$0xff] }
 0x2e0   :  { %v991_v42 = vadd.f32 %v975_v36, %v967_v56  ;;  %v1015_v3 = vmul.f32 %v2325_v26, %v975_v36  ;;  %v746_v44 = vmul.f32 %v3029_v2, %v722_v61  ;;  %v724_v18 = vadd.f32 0.008333334, %v700_v16  ;;  %2071 = vmatmul.mubr.msk.f32.gmra.mrb[18].mxu1 %vm385_vm5, %v2326_v28 }
 0x2e1   :  { %v817_v19 = vadd.f32 0.16666667, %v793_v62  ;;  %v760_v48 = vadd.f32 0.041666668, %v736_v21  ;;  %v747_v27 = vmul.f32 %v3033_v5, %v723_v37  ;;  %v701_v13 = vmul.f32 0.0013888889, %v3048_v49  ;;  %1427 = vmatprep.mubr.f32.mxu1 %v2470_v0 }
 0x2e2   :  { %v999_v56 = vadd.f32 %v991_v42, %v983_v55  ;;  %v1023_v51 = vadd.f32 %v1015_v3, %v1007_v25  ;;  %v770_v34 = vadd.f32 0.041666668, %v746_v44  ;;  %v748_v35 = vmul.f32 %v3036_v63, %v724_v18 }
 0x2e3   :  { %v841_v38 = vmul.f32 %v3015_v45, %v817_v19  ;;  %v784_v24 = vmul.f32 %v3025_v22, %v760_v48  ;;  %v771_v54 = vadd.f32 0.041666668, %v747_v27  ;;  %v725_v52 = vadd.f32 0.008333334, %v701_v13  ;;  %v2329_v19 = vld [vmem:[%s3527_s0 + $0x8] sm:$0xff] }
 0x2e4   :  { %v1039_v12 = vadd.f32 %v1031_v57, %v1023_v51  ;;  %2241 = vrcp.f32 %v999_v56  ;;  %v794_v53 = vmul.f32 %v3029_v2, %v770_v34  ;;  %v772_v6 = vadd.f32 0.041666668, %v748_v35  ;;  %2072 = vmatmul.mubr.msk.f32.gmra.mrb[20].mxu1 %vm385_vm5, %v2327_v14  ;;  %v2330_v51 = vld [vmem:[%s3531_s4 + $0x28] sm:$0xff] }
 0x2e5   :  { %v865_v55 = vadd.f32 0.5, %v841_v38  ;;  %v808_v31 = vadd.f32 0.16666667, %v784_v24  ;;  %v795_v39 = vmul.f32 %v3033_v5, %v771_v54  ;;  %v749_v11 = vmul.f32 %v3048_v49, %v725_v52  ;;  %1433 = vmatprep.mubr.f32.mxu1 %v2470_v0 }
 0x2e6   :  { %v818_v9 = vadd.f32 0.16666667, %v794_v53  ;;  %v796_v43 = vmul.f32 %v3036_v63, %v772_v6  ;;  %v3072_v25 = vadd.f32 -0.5, %v654_v17  ;;  %v3077_v57 = vmul.f32 1.6487212, %v3017_v10 }
 0x2e7   :  { %v889_v23 = vmul.f32 %v3015_v45, %v865_v55  ;;  %v832_v33 = vmul.f32 %v3025_v22, %v808_v31  ;;  %v819_v15 = vadd.f32 0.16666667, %v795_v39  ;;  %v773_v1 = vadd.f32 0.041666668, %v749_v11 }
 0x2e8   :  { %v842_v36 = vmul.f32 %v3029_v2, %v818_v9  ;;  %v820_v61 = vadd.f32 0.16666667, %v796_v43  ;;  %v702_v16 = vmul.f32 0.0013888889, %v3072_v25  ;;  %2073 = vmatmul.mubr.msk.f32.gmra.mrb[22].mxu1 %vm385_vm5, %v2328_v8  ;;  %v960_v10 = vadd.f32 1.0, %v936_v47 }
 0x2e9   :  { %v913_v59 = vadd.f32 1.0, %v889_v23  ;;  %v856_v17 = vadd.f32 0.5, %v832_v33  ;;  %v843_v62 = vmul.f32 %v3033_v5, %v819_v15  ;;  %v797_v21 = vmul.f32 %v3048_v49, %v773_v1  ;;  %1439 = vmatprep.mubr.f32.mxu1 %v2470_v0  ;;  %v2331_v23 = vld [vmem:[%s3531_s4 + $0x30] sm:$0xff] }
 0x2ea   :  { %v866_v37 = vadd.f32 0.5, %v842_v36  ;;  %v844_v42 = vmul.f32 %v3036_v63, %v820_v61  ;;  %v726_v26 = vadd.f32 0.008333334, %v702_v16  ;;  %v1008_v48 = vmul.f32 %v2329_v19, %v3077_v57 }
 0x2eb   :  { %v937_v3 = vmul.f32 %v3015_v45, %v913_v59  ;;  %v880_v44 = vmul.f32 %v3025_v22, %v856_v17  ;;  %v867_v18 = vadd.f32 0.5, %v843_v62  ;;  %v821_v28 = vadd.f32 0.16666667, %v797_v21  ;;  %v2333_v62 = vld [vmem:[#allocation5 + $0x8] sm:$0xff] }
 0x2ec   :  { %v890_v27 = vmul.f32 %v3029_v2, %v866_v37  ;;  %v868_v13 = vadd.f32 0.5, %v844_v42  ;;  %v750_v56 = vmul.f32 %v3072_v25, %v726_v26  ;;  %2074 = vmatmul.mubr.msk.f32.gmra.mrb[24].mxu1 %vm385_vm5, %v2330_v51  ;;  %v984_v54 = vmul.f32 1.6487212, %v960_v10  ;;  %v2335_v42 = vld [vmem:[#allocation2 + $0x8] sm:$0xff] }
 0x2ed   :  { %v961_v45 = vadd.f32 1.0, %v937_v3  ;;  %v904_v34 = vadd.f32 1.0, %v880_v44  ;;  %v891_v35 = vmul.f32 %v3033_v5, %v867_v18  ;;  %v845_v38 = vmul.f32 %v3048_v49, %v821_v28  ;;  %1445 = vmatprep.mubr.f32.mxu1 %v2470_v0  ;;  %v2336_v18 = vld [vmem:[#allocation5 + $0x18] sm:$0xff] }
 0x2ee   :  { %v2242_v24 = vpop.eup %2241  ;;  %v914_v52 = vadd.f32 1.0, %v890_v27  ;;  %v892_v53 = vmul.f32 %v3036_v63, %v868_v13  ;;  %v774_v6 = vadd.f32 0.041666668, %v750_v56 }
 0x2ef   :  { %v1048_v14 = vmul.f32 %v2242_v24, %v1039_v12  ;;  %v985_v55 = vmul.f32 1.6487212, %v961_v45  ;;  %v928_v31 = vmul.f32 %v3025_v22, %v904_v34  ;;  %v915_v39 = vadd.f32 1.0, %v891_v35  ;;  %v2332_v12 = vld [vmem:[#allocation5 + $0x10] sm:$0xff]  ;;  %v2337_v45 = vld [vmem:[#allocation5 + $0x20] sm:$0xff] }
 0x2f0   :  { %v938_v11 = vmul.f32 %v3029_v2, %v914_v52  ;;  %v916_v47 = vadd.f32 1.0, %v892_v53  ;;  %v869_v9 = vadd.f32 0.5, %v845_v38  ;;  %v798_v43 = vmul.f32 %v3072_v25, %v774_v6  ;;  %2075 = vmatmul.mubr.msk.f32.gmra.mrb[26].mxu1 %vm385_vm5, %v2331_v23  ;;  %v2338_v38 = vld [vmem:[#allocation5 + $0x28] sm:$0xff] }
 0x2f1   :  { %1063 = vst [vmem:[#allocation8] sm:$0xff] %v1048_v14  ;;  %v1001_v33 = vadd.f32 %v2882_v60, %v985_v55  ;;  %v1033_v15 = vmul.f32 %v2332_v12, %v985_v55  ;;  %v952_v1 = vadd.f32 1.0, %v928_v31  ;;  %v939_v22 = vmul.f32 %v3033_v5, %v915_v39  ;;  %1451 = vmatprep.mubr.f32.mxu1 %v2470_v0  ;;  %v2334_v5 = vld [vmem:[%s3531_s4 + $0x38] sm:$0xff]  ;;  %v2340_v53 = vld [vmem:[%s3531_s4 + $0x48] sm:$0xff]  ;;  %v2341_v14 = vld [vmem:[#allocation5 + $0x30] sm:$0xff] }
 0x2f2   :  { %v962_v2 = vadd.f32 1.0, %v938_v11  ;;  %v940_v36 = vmul.f32 %v3036_v63, %v916_v47  ;;  %v893_v61 = vmul.f32 %v3048_v49, %v869_v9  ;;  %v822_v16 = vadd.f32 0.16666667, %v798_v43  ;;  %v2342_v47 = vld [vmem:[%s3531_s4 + $0x50] sm:$0xff] }
 0x2f3   :  { %v1041_v8 = vadd.f32 %v1033_v15, %v2889_v41  ;;  %2243 = vrcp.f32 %v1001_v33  ;;  %v976_v59 = vmul.f32 1.6487212, %v952_v1  ;;  %v963_v17 = vadd.f32 1.0, %v939_v22 }
 0x2f4   :  { %v1032_v60 = vmul.f32 %v2333_v62, %v984_v54  ;;  %v986_v21 = vmul.f32 1.6487212, %v962_v2  ;;  %v964_v10 = vadd.f32 1.0, %v940_v36  ;;  %v917_v37 = vadd.f32 1.0, %v893_v61  ;;  %2076 = vmatmul.mubr.msk.f32.gmra.mrb[28].mxu1 %vm385_vm5, %v2334_v5  ;;  %v2344_v2 = vld [vmem:[#allocation5 + $0x38] sm:$0xff] }
 0x2f5   :  { %v992_v63 = vadd.f32 %v976_v59, %v3077_v57  ;;  %v1016_v26 = vmul.f32 %v2335_v42, %v976_v59  ;;  %v987_v3 = vmul.f32 1.6487212, %v963_v17  ;;  %v846_v41 = vmul.f32 %v3072_v25, %v822_v16  ;;  %1457 = vmatprep.mubr.f32.mxu1 %v2470_v0 }
 0x2f6   :  { %v1002_v44 = vadd.f32 %v2885_v7, %v986_v21  ;;  %v1034_v28 = vmul.f32 %v2336_v18, %v986_v21  ;;  %v988_v19 = vmul.f32 1.6487212, %v964_v10  ;;  %v941_v27 = vmul.f32 %v3048_v49, %v917_v37  ;;  %v2339_v7 = vld [vmem:[%s3531_s4 + $0x40] sm:$0xff] }
 0x2f7   :  { %v1000_v13 = vadd.f32 %v992_v63, %v984_v54  ;;  %v1024_v56 = vadd.f32 %v1016_v26, %v1008_v48  ;;  %v1003_v51 = vadd.f32 %v2899_v32, %v987_v3  ;;  %v1035_v57 = vmul.f32 %v2337_v45, %v987_v3 }
 0x2f8   :  { %v1042_v34 = vadd.f32 %v1034_v28, %v2893_v20  ;;  %2245 = vrcp.f32 %v1002_v44  ;;  %v1004_v35 = vadd.f32 %v2961_v29, %v988_v19  ;;  %v1036_v24 = vmul.f32 %v2338_v38, %v988_v19  ;;  %2077 = vmatmul.mubr.msk.f32.gmra.mrb[30].mxu1 %vm385_vm5, %v2339_v7 }
 0x2f9   :  { %v1040_v49 = vadd.f32 %v1032_v60, %v1024_v56  ;;  %2247 = vrcp.f32 %v1000_v13  ;;  %v1043_v48 = vadd.f32 %v1035_v57, %v2902_v40  ;;  %v965_v32 = vadd.f32 1.0, %v941_v27  ;;  %1463 = vmatprep.mubr.f32.mxu1 %v2470_v0 }
 0x2fa   :  { %2249 = vrcp.f32 %v1003_v51  ;;  %v1044_v20 = vadd.f32 %v1036_v24, %v2966_v46  ;;  %v870_v54 = vadd.f32 0.5, %v846_v41 }
 0x2fb   :  { %2251 = vrcp.f32 %v1004_v35  ;;  %v989_v29 = vmul.f32 1.6487212, %v965_v32 }
 0x2fc   :  { %v894_v52 = vmul.f32 %v3072_v25, %v870_v54  ;;  %2078 = vmatmul.mubr.msk.f32.gmra.mrb[32].mxu1 %vm385_vm5, %v2340_v53 }
 0x2fd   :  { %v2244_v6 = vpop.eup %2243  ;;  %v1005_v40 = vadd.f32 %v2975_v4, %v989_v29  ;;  %v1037_v55 = vmul.f32 %v2341_v14, %v989_v29  ;;  %1469 = vmatprep.mubr.f32.mxu1 %v2470_v0 }
 0x2fe   :  { %v1052_v31 = vmul.f32 %v2244_v6, %v1041_v8  ;;  %v918_v46 = vadd.f32 1.0, %v894_v52 }
 0x2ff   :  { %v1045_v39 = vadd.f32 %v1037_v55, %v2978_v50  ;;  %2253 = vrcp.f32 %v1005_v40  ;;  %v2343_v50 = vld [vmem:[%s3531_s4 + $0x58] sm:$0xff] }
 0x300   :  { %1065 = vst [vmem:[#allocation8 + $0x10] sm:$0xff] %v1052_v31  ;;  %v942_v11 = vmul.f32 %v3072_v25, %v918_v46  ;;  %2079 = vmatmul.mubr.msk.f32.gmra.mrb[34].mxu1 %vm385_vm5, %v2342_v47 }
 0x301   :  { %1475 = vmatprep.mubr.f32.mxu1 %v2470_v0 }
 0x302   :  { %v2246_v4 = vpop.eup %2245  ;;  %v966_v9 = vadd.f32 1.0, %v942_v11 }
 0x303   :  { %v2248_v43 = vpop.eup %2247  ;;  %v1054_v23 = vmul.f32 %v2246_v4, %v1042_v34 }
 0x304   :  { %v2250_v33 = vpop.eup %2249  ;;  %v1050_v12 = vmul.f32 %v2248_v43, %v1040_v49  ;;  %v990_v15 = vmul.f32 1.6487212, %v966_v9  ;;  %2080 = vmatmul.mubr.msk.f32.gmra.mrb[36].mxu1 %vm385_vm5, %v2343_v50 }
 0x305   :  { %v2252_v25 = vpop.eup %2251  ;;  %1066 = vst [vmem:[#allocation8 + $0x18] sm:$0xff] %v1054_v23  ;;  %v1056_v1 = vmul.f32 %v2250_v33, %v1043_v48 }
 0x306   :  { %1064 = vst [vmem:[#allocation8 + $0x8] sm:$0xff] %v1050_v12  ;;  %v1058_v22 = vmul.f32 %v2252_v25, %v1044_v20  ;;  %v1006_v0 = vadd.f32 %v2981_v30, %v990_v15  ;;  %v1038_v36 = vmul.f32 %v2344_v2, %v990_v15 }
 0x307   :  { %1067 = vst [vmem:[#allocation8 + $0x20] sm:$0xff] %v1056_v1 }
 0x308   :  { %1068 = vst [vmem:[#allocation8 + $0x28] sm:$0xff] %v1058_v22  ;;  %v1046_v61 = vadd.f32 %v1038_v36, %v2984_v58  ;;  %2255 = vrcp.f32 %v1006_v0 }
 0x309   :  { %v2254_v16 = vpop.eup %2253 }
 0x30a   :  { %v1060_v8 = vmul.f32 %v2254_v16, %v1045_v39 }
 0x30c   :  { %1069 = vst [vmem:[#allocation8 + $0x30] sm:$0xff] %v1060_v8 }
 0x312   :  { %v2256_v59 = vpop.eup %2255 }
 0x313   :  { %v1062_v17 = vmul.f32 %v2256_v59, %v1046_v61 }
 0x315   :  { %1070 = vst [vmem:[#allocation8 + $0x38] sm:$0xff] %v1062_v17 }
 0x3ab   :  { %v1411_v62 = vpop.f32.mrb[14].mxu1 }
 0x3ac   :  { %v1482_v60 = vmul.f32 0.5, %v1411_v62  ;;  %v1413_v21 = vpop.f32.mrb[15].mxu1 }
 0x3ad   :  { %v1483_v10 = vmul.f32 0.5, %v1413_v21 }
 0x3ae   :  { %2257 = vtanh.f32 %v1482_v60 }
 0x3af   :  { %2259 = vtanh.f32 %v1483_v10  ;;  %v1417_v30 = vpop.f32.mrb[16].mxu1 }
 0x3b0   :  { %v1484_v37 = vmul.f32 0.5, %v1417_v30  ;;  %v1419_v5 = vpop.f32.mrb[17].mxu1 }
 0x3b1   :  { %v1485_v63 = vmul.f32 0.5, %v1419_v5 }
 0x3b2   :  { %2261 = vtanh.f32 %v1484_v37 }
 0x3b3   :  { %2263 = vtanh.f32 %v1485_v63  ;;  %v1423_v58 = vpop.f32.mrb[18].mxu1 }
 0x3b4   :  { %v1486_v42 = vmul.f32 0.5, %v1423_v58  ;;  %v1425_v26 = vpop.f32.mrb[19].mxu1 }
 0x3b5   :  { %v1487_v3 = vmul.f32 0.5, %v1425_v26 }
 0x3b6   :  { %2265 = vtanh.f32 %v1486_v42 }
 0x3b7   :  { %2267 = vtanh.f32 %v1487_v3  ;;  %v1429_v41 = vpop.f32.mrb[20].mxu1 }
 0x3b8   :  { %v2258_v44 = vpop.eup %2257  ;;  %v1488_v18 = vmul.f32 0.5, %v1429_v41  ;;  %v1431_v28 = vpop.f32.mrb[21].mxu1 }
 0x3b9   :  { %v2260_v19 = vpop.eup %2259  ;;  %v1530_v27 = vadd.f32 1.0, %v2258_v44  ;;  %v1489_v13 = vmul.f32 0.5, %v1431_v28 }
 0x3ba   :  { %v1531_v56 = vadd.f32 1.0, %v2260_v19  ;;  %2269 = vtanh.f32 %v1488_v18 }
 0x3bb   :  { %v1554_v51 = vmul.f32 0.5, %v1530_v27  ;;  %2271 = vtanh.f32 %v1489_v13  ;;  %v1435_v45 = vpop.f32.mrb[22].mxu1 }
 0x3bc   :  { %v2262_v57 = vpop.eup %2261  ;;  %v1555_v34 = vmul.f32 0.5, %v1531_v56  ;;  %v1490_v35 = vmul.f32 0.5, %v1435_v45  ;;  %v1437_v38 = vpop.f32.mrb[23].mxu1 }
 0x3bd   :  { %v2264_v24 = vpop.eup %2263  ;;  %v3157_v7 = vadd.f32 -0.5, %v1554_v51  ;;  %v1532_v49 = vadd.f32 1.0, %v2262_v57  ;;  %v1491_v48 = vmul.f32 0.5, %v1437_v38 }
 0x3be   :  { %v3159_v32 = vadd.f32 -0.5, %v1555_v34  ;;  %v1533_v20 = vadd.f32 1.0, %v2264_v24  ;;  %2273 = vtanh.f32 %v1490_v35 }
 0x3bf   :  { %v1602_v54 = vmul.f32 0.0013888889, %v3157_v7  ;;  %v1556_v29 = vmul.f32 0.5, %v1532_v49  ;;  %v1441_v52 = vpop.f32.mrb[24].mxu1  ;;  %2275 = vtanh.f32 %v1491_v48 }
 0x3c0   :  { %v2266_v53 = vpop.eup %2265  ;;  %v1603_v6 = vmul.f32 0.0013888889, %v3159_v32  ;;  %v1557_v40 = vmul.f32 0.5, %v1533_v20  ;;  %v1492_v14 = vmul.f32 0.5, %v1441_v52  ;;  %v1443_v55 = vpop.f32.mrb[25].mxu1 }
 0x3c1   :  { %v2268_v31 = vpop.eup %2267  ;;  %v1626_v46 = vadd.f32 0.008333334, %v1602_v54  ;;  %v3163_v39 = vadd.f32 -0.5, %v1556_v29  ;;  %v1534_v11 = vadd.f32 1.0, %v2266_v53  ;;  %v1493_v43 = vmul.f32 0.5, %v1443_v55 }
 0x3c2   :  { %v1627_v47 = vadd.f32 0.008333334, %v1603_v6  ;;  %v3165_v4 = vadd.f32 -0.5, %v1557_v40  ;;  %v1535_v9 = vadd.f32 1.0, %v2268_v31  ;;  %2277 = vtanh.f32 %v1492_v14 }
 0x3c3   :  { %v1650_v23 = vmul.f32 %v3157_v7, %v1626_v46  ;;  %v1604_v33 = vmul.f32 0.0013888889, %v3163_v39  ;;  %v1558_v12 = vmul.f32 0.5, %v1534_v11  ;;  %v1447_v15 = vpop.f32.mrb[26].mxu1  ;;  %2279 = vtanh.f32 %v1493_v43 }
 0x3c4   :  { %v2270_v50 = vpop.eup %2269  ;;  %v1651_v25 = vmul.f32 %v3159_v32, %v1627_v47  ;;  %v1605_v1 = vmul.f32 0.0013888889, %v3165_v4  ;;  %v1559_v22 = vmul.f32 0.5, %v1535_v9  ;;  %v1494_v0 = vmul.f32 0.5, %v1447_v15  ;;  %v3171_v2 = vpop.f32.mrb[27].mxu1 }
 0x3c5   :  { %v2272_v36 = vpop.eup %2271  ;;  %v1674_v61 = vadd.f32 0.041666668, %v1650_v23  ;;  %v1628_v16 = vadd.f32 0.008333334, %v1604_v33  ;;  %v3173_v8 = vadd.f32 -0.5, %v1558_v12  ;;  %v1536_v59 = vadd.f32 1.0, %v2270_v50 }
 0x3c6   :  { %v1675_v17 = vadd.f32 0.041666668, %v1651_v25  ;;  %v1629_v62 = vadd.f32 0.008333334, %v1605_v1  ;;  %v3175_v60 = vadd.f32 -0.5, %v1559_v22  ;;  %v1537_v21 = vadd.f32 1.0, %v2272_v36 }
 0x3c7   :  { %v1698_v10 = vmul.f32 %v3157_v7, %v1674_v61  ;;  %v1652_v30 = vmul.f32 %v3163_v39, %v1628_v16  ;;  %v1606_v37 = vmul.f32 0.0013888889, %v3173_v8  ;;  %v1560_v5 = vmul.f32 0.5, %v1536_v59  ;;  %v3180_v63 = vpop.f32.mrb[28].mxu1 }
 0x3c8   :  { %v1699_v58 = vmul.f32 %v3159_v32, %v1675_v17  ;;  %v1653_v42 = vmul.f32 %v3165_v4, %v1629_v62  ;;  %v1607_v26 = vmul.f32 0.0013888889, %v3175_v60  ;;  %v1561_v3 = vmul.f32 0.5, %v1537_v21  ;;  %v3185_v41 = vpop.f32.mrb[29].mxu1  ;;  %v2274_v19 = vpop.eup %2273 }
 0x3c9   :  { %v1722_v44 = vadd.f32 0.16666667, %v1698_v10  ;;  %v1676_v18 = vadd.f32 0.041666668, %v1652_v30  ;;  %v1630_v28 = vadd.f32 0.008333334, %v1606_v37  ;;  %2281 = vtanh.f32 %v1494_v0  ;;  %v2276_v51 = vpop.eup %2275 }
 0x3ca   :  { %v1723_v27 = vadd.f32 0.16666667, %v1699_v58  ;;  %v1677_v13 = vadd.f32 0.041666668, %v1653_v42  ;;  %v1631_v56 = vadd.f32 0.008333334, %v1607_v26 }
 0x3cb   :  { %v1746_v45 = vmul.f32 %v3157_v7, %v1722_v44  ;;  %v1700_v57 = vmul.f32 %v3163_v39, %v1676_v18  ;;  %v1654_v34 = vmul.f32 %v3173_v8, %v1630_v28  ;;  %v3190_v35 = vadd.f32 -0.5, %v1560_v5  ;;  %v3192_v38 = vpop.f32.mrb[30].mxu1 }
 0x3cc   :  { %v1747_v24 = vmul.f32 %v3159_v32, %v1723_v27  ;;  %v1701_v49 = vmul.f32 %v3165_v4, %v1677_v13  ;;  %v1655_v48 = vmul.f32 %v3175_v60, %v1631_v56  ;;  %v3197_v20 = vadd.f32 -0.5, %v1561_v3  ;;  %v3199_v54 = vpop.f32.mrb[31].mxu1  ;;  %v3201_v29 = vpop.eup %2277 }
 0x3cd   :  { %v1770_v52 = vadd.f32 0.5, %v1746_v45  ;;  %v1724_v53 = vadd.f32 0.16666667, %v1700_v57  ;;  %v1678_v6 = vadd.f32 0.041666668, %v1654_v34  ;;  %v3203_v40 = vadd.f32 1.0, %v2274_v19  ;;  %v3219_v62 = vpop.eup %2279 }
 0x3ce   :  { %v1771_v14 = vadd.f32 0.5, %v1747_v24  ;;  %v1725_v55 = vadd.f32 0.16666667, %v1701_v49  ;;  %v1679_v31 = vadd.f32 0.041666668, %v1655_v48  ;;  %v3205_v46 = vadd.f32 1.0, %v2276_v51 }
 0x3cf   :  { %v1794_v11 = vmul.f32 %v3157_v7, %v1770_v52  ;;  %v1748_v47 = vmul.f32 %v3163_v39, %v1724_v53  ;;  %v1702_v9 = vmul.f32 %v3173_v8, %v1678_v6  ;;  %v1608_v43 = vmul.f32 0.0013888889, %v3190_v35  ;;  %v3211_v23 = vpop.f32.mrb[32].mxu1 }
 0x3d0   :  { %v1795_v33 = vmul.f32 %v3159_v32, %v1771_v14  ;;  %v1749_v12 = vmul.f32 %v3165_v4, %v1725_v55  ;;  %v1703_v15 = vmul.f32 %v3175_v60, %v1679_v31  ;;  %v1609_v50 = vmul.f32 0.0013888889, %v3197_v20  ;;  %v3217_v25 = vpop.f32.mrb[33].mxu1 }
 0x3d1   :  { %v1818_v1 = vadd.f32 1.0, %v1794_v11  ;;  %v1772_v22 = vadd.f32 0.5, %v1748_v47  ;;  %v1726_v0 = vadd.f32 0.16666667, %v1702_v9  ;;  %v1632_v36 = vadd.f32 0.008333334, %v1608_v43 }
 0x3d2   :  { %v1819_v61 = vadd.f32 1.0, %v1795_v33  ;;  %v1773_v16 = vadd.f32 0.5, %v1749_v12  ;;  %v1727_v59 = vadd.f32 0.16666667, %v1703_v15  ;;  %v1633_v17 = vadd.f32 0.008333334, %v1609_v50 }
 0x3d3   :  { %v1842_v21 = vmul.f32 %v3157_v7, %v1818_v1  ;;  %v1796_v10 = vmul.f32 %v3163_v39, %v1772_v22  ;;  %v1750_v30 = vmul.f32 %v3173_v8, %v1726_v0  ;;  %v1656_v37 = vmul.f32 %v3190_v35, %v1632_v36  ;;  %v3225_v5 = vpop.f32.mrb[34].mxu1  ;;  %v3227_v58 = vpop.eup %2281 }
 0x3d4   :  { %v1843_v42 = vmul.f32 %v3159_v32, %v1819_v61  ;;  %v1797_v26 = vmul.f32 %v3165_v4, %v1773_v16  ;;  %v1751_v3 = vmul.f32 %v3175_v60, %v1727_v59  ;;  %v1657_v44 = vmul.f32 %v3197_v20, %v1633_v17  ;;  %v3233_v18 = vpop.f32.mrb[35].mxu1  ;;  %v2347_v59 = vld [vmem:[%s3527_s0 + $0x50] sm:$0xff] }
 0x3d5   :  { %v1866_v7 = vadd.f32 1.0, %v1842_v21  ;;  %v1820_v28 = vadd.f32 1.0, %v1796_v10  ;;  %v1774_v19 = vadd.f32 0.5, %v1750_v30  ;;  %v1680_v27 = vadd.f32 0.041666668, %v1656_v37 }
 0x3d6   :  { %v1867_v13 = vadd.f32 1.0, %v1843_v42  ;;  %v1821_v56 = vadd.f32 1.0, %v1797_v26  ;;  %v1775_v51 = vadd.f32 0.5, %v1751_v3  ;;  %v1681_v45 = vadd.f32 0.041666668, %v1657_v44 }
 0x3d7   :  { %v3235_v57 = vmul.f32 1.6487212, %v1866_v7  ;;  %v1844_v32 = vmul.f32 %v3163_v39, %v1820_v28  ;;  %v1798_v34 = vmul.f32 %v3173_v8, %v1774_v19  ;;  %v1704_v24 = vmul.f32 %v3190_v35, %v1680_v27  ;;  %v3240_v49 = vpop.f32.mrb[36].mxu1  ;;  %v2345_v39 = vld [vmem:[%s3527_s0 + $0x40] sm:$0xff] }
 0x3d8   :  { %v3242_v48 = vmul.f32 1.6487212, %v1867_v13  ;;  %v1845_v52 = vmul.f32 %v3165_v4, %v1821_v56  ;;  %v1799_v53 = vmul.f32 %v3175_v60, %v1775_v51  ;;  %v1705_v6 = vmul.f32 %v3197_v20, %v1681_v45  ;;  %v3247_v14 = vpop.f32.mrb[37].mxu1  ;;  %v2346_v4 = vld [vmem:[%s3527_s0 + $0x48] sm:$0xff]  ;;  %v2349_v13 = vld [vmem:[%s3527_s0 + $0x60] sm:$0xff] }
 0x3d9   :  { %v3253_v55 = vmul.f32 %v2345_v39, %v3235_v57  ;;  %v1868_v31 = vadd.f32 1.0, %v1844_v32  ;;  %v1822_v11 = vadd.f32 1.0, %v1798_v34  ;;  %v1728_v47 = vadd.f32 0.16666667, %v1704_v24 }
 0x3da   :  { %v3259_v9 = vmul.f32 %v2346_v4, %v3242_v48  ;;  %v1869_v43 = vadd.f32 1.0, %v1845_v52  ;;  %v1823_v33 = vadd.f32 1.0, %v1799_v53  ;;  %v1729_v12 = vadd.f32 0.16666667, %v1705_v6 }
 0x3db   :  { %v3261_v15 = vmul.f32 1.6487212, %v1868_v31  ;;  %v1846_v50 = vmul.f32 %v3173_v8, %v1822_v11  ;;  %v1752_v1 = vmul.f32 %v3190_v35, %v1728_v47  ;;  %v1562_v22 = vmul.f32 0.5, %v3203_v40  ;;  %v2348_v40 = vld [vmem:[%s3527_s0 + $0x58] sm:$0xff] }
 0x3dc   :  { %v3266_v0 = vmul.f32 1.6487212, %v1869_v43  ;;  %v1847_v36 = vmul.f32 %v3175_v60, %v1823_v33  ;;  %v1753_v61 = vmul.f32 %v3197_v20, %v1729_v12  ;;  %v1563_v16 = vmul.f32 0.5, %v3205_v46 }
 0x3dd   :  { %v3275_v17 = vmul.f32 %v2347_v59, %v3261_v15  ;;  %v1870_v8 = vadd.f32 1.0, %v1846_v50  ;;  %v1776_v21 = vadd.f32 0.5, %v1752_v1  ;;  %v3277_v10 = vadd.f32 -0.5, %v1562_v22 }
 0x3de   :  { %v3283_v60 = vmul.f32 %v2348_v40, %v3266_v0  ;;  %v1871_v30 = vadd.f32 1.0, %v1847_v36  ;;  %v1777_v46 = vadd.f32 0.5, %v1753_v61  ;;  %v3285_v37 = vadd.f32 -0.5, %v1563_v16  ;;  %v2351_v40 = vld [vmem:[%s3527_s0 + $0x70] sm:$0xff] }
 0x3df   :  { %v3287_v42 = vmul.f32 1.6487212, %v1870_v8  ;;  %v1800_v26 = vmul.f32 %v3190_v35, %v1776_v21  ;;  %v1610_v3 = vmul.f32 0.0013888889, %v3277_v10  ;;  %v1540_v44 = vadd.f32 1.0, %v3201_v29  ;;  %v2350_v29 = vld [vmem:[%s3527_s0 + $0x68] sm:$0xff] }
 0x3e0   :  { %v3292_v7 = vmul.f32 1.6487212, %v1871_v30  ;;  %v1801_v28 = vmul.f32 %v3197_v20, %v1777_v46  ;;  %v1611_v19 = vmul.f32 0.0013888889, %v3285_v37  ;;  %v1541_v27 = vadd.f32 1.0, %v3219_v62 }
 0x3e1   :  { %v3301_v56 = vmul.f32 %v2349_v13, %v3287_v42  ;;  %v1824_v51 = vadd.f32 1.0, %v1800_v26  ;;  %v1634_v45 = vadd.f32 0.008333334, %v1610_v3  ;;  %v1564_v32 = vmul.f32 0.5, %v1540_v44  ;;  %v2352_v44 = vld [vmem:[%s3527_s0 + $0x78] sm:$0xff]  ;;  %s2474_s0 = smov [#allocation8]  }
 0x3e2   :  { %v3307_v34 = vmul.f32 %v2350_v29, %v3292_v7  ;;  %v1825_v24 = vadd.f32 1.0, %v1801_v28  ;;  %v1635_v52 = vadd.f32 0.008333334, %v1611_v19  ;;  %v1565_v62 = vmul.f32 0.5, %v1541_v27  ;;  %s2000_s24 = sshll.u32 %s2474_s0, 4  ;;  %s2001_s24 = int_to_ptr.vmem [resolvable:$true] %s2000_s24 }
 0x3e3   :  { %v1848_v53 = vmul.f32 %v3190_v35, %v1824_v51  ;;  %v1658_v6 = vmul.f32 %v3277_v10, %v1634_v45  ;;  %v3311_v39 = vadd.f32 -0.5, %v1564_v32  ;;  %v1542_v31 = vadd.f32 1.0, %v3227_v58  ;;  %s2435_s11 = scalar_lea.vmem %s2001_s24, 2048  ;;  %p2440_p11 = scmp.lt.s32.totalorder %s2001_s24, %s2001_s24 }
 0x3e4   :  { %v1849_v11 = vmul.f32 %v3197_v20, %v1825_v24  ;;  %v1659_v47 = vmul.f32 %v3285_v37, %v1635_v52  ;;  %v3316_v4 = vadd.f32 -0.5, %v1565_v62  ;;  %v1495_v43 = vmul.f32 0.5, %v3171_v2  ;;  %p2436_p10 = scmp.ne.s32.totalorder %s2001_s24, %s2435_s11  ;;  %p2441_p12 = scmp.lt.s32.totalorder %s2435_s11, %s2435_s11 }
 0x3e5   :  { %v1872_v33 = vadd.f32 1.0, %v1848_v53  ;;  %v1682_v12 = vadd.f32 0.041666668, %v1658_v6  ;;  %v1612_v50 = vmul.f32 0.0013888889, %v3311_v39  ;;  %v1566_v1 = vmul.f32 0.5, %v1542_v31 }
 0x3e6   :  { %v1873_v35 = vadd.f32 1.0, %v1849_v11  ;;  %v1683_v22 = vadd.f32 0.041666668, %v1659_v47  ;;  %v1613_v36 = vmul.f32 0.0013888889, %v3316_v4  ;;  %2283 = vtanh.f32 %v1495_v43  ;;  %p2442_p13 = por %p2441_p12, %p2440_p11 }
 0x3e7   :  { %v3321_v61 = vmul.f32 1.6487212, %v1872_v33  ;;  %v1706_v20 = vmul.f32 %v3277_v10, %v1682_v12  ;;  %v1636_v58 = vadd.f32 0.008333334, %v1612_v50  ;;  %v3324_v16 = vadd.f32 -0.5, %v1566_v1 }
 0x3e8   :  { %v3326_v59 = vmul.f32 1.6487212, %v1873_v35  ;;  %v1707_v2 = vmul.f32 %v3285_v37, %v1683_v22  ;;  %v1637_v8 = vadd.f32 0.008333334, %v1613_v36  ;;  %v1496_v21 = vmul.f32 0.5, %v3180_v63  ;;  %p2443_p0 = pnand %p2442_p13, %p2436_p10 }
 0x3e9   :  { %v3334_v30 = vmul.f32 %v2351_v40, %v3321_v61  ;;  %v1730_v46 = vadd.f32 0.16666667, %v1706_v20  ;;  %v1660_v26 = vmul.f32 %v3311_v39, %v1636_v58  ;;  %v1614_v3 = vmul.f32 0.0013888889, %v3324_v16 }
 0x3ea   :  { %v3342_v28 = vmul.f32 %v2352_v44, %v3326_v59  ;;  %v1731_v63 = vadd.f32 0.16666667, %v1707_v2  ;;  %v1661_v19 = vmul.f32 %v3316_v4, %v1637_v8  ;;  %2285 = vtanh.f32 %v1496_v21 }
 0x3eb   :  { %v1754_v27 = vmul.f32 %v3277_v10, %v1730_v46  ;;  %v1684_v13 = vadd.f32 0.041666668, %v1660_v26  ;;  %v1638_v51 = vadd.f32 0.008333334, %v1614_v3  ;;  %v1497_v45 = vmul.f32 0.5, %v3185_v41 }
 0x3ec   :  { %v1755_v32 = vmul.f32 %v3285_v37, %v1731_v63  ;;  %v1685_v29 = vadd.f32 0.041666668, %v1661_v19  ;;  %v1498_v24 = vmul.f32 0.5, %v3192_v38  ;;  %v1499_v52 = vmul.f32 0.5, %v3199_v54 }
 0x3ed   :  { %v1778_v62 = vadd.f32 0.5, %v1754_v27  ;;  %v1708_v53 = vmul.f32 %v3311_v39, %v1684_v13  ;;  %v1662_v6 = vmul.f32 %v3324_v16, %v1638_v51  ;;  %2287 = vtanh.f32 %v1497_v45 }
 0x3ee   :  { %v1779_v31 = vadd.f32 0.5, %v1755_v32  ;;  %v1709_v11 = vmul.f32 %v3316_v4, %v1685_v29  ;;  %2289 = vtanh.f32 %v1498_v24  ;;  %v1500_v47 = vmul.f32 0.5, %v3211_v23 }
 0x3ef   :  { %v1802_v41 = vmul.f32 %v3277_v10, %v1778_v62  ;;  %v1732_v43 = vadd.f32 0.16666667, %v1708_v53  ;;  %v1686_v33 = vadd.f32 0.041666668, %v1662_v6  ;;  %2291 = vtanh.f32 %v1499_v52 }
 0x3f0   :  { %v2284_v38 = vpop.eup %2283  ;;  %v1803_v54 = vmul.f32 %v3285_v37, %v1779_v31  ;;  %v1733_v12 = vadd.f32 0.16666667, %v1709_v11  ;;  %2293 = vtanh.f32 %v1500_v47  ;;  %v1501_v50 = vmul.f32 0.5, %v3217_v25  ;;  %v2353_v11 = vld [vmem:[#allocation2 + $0x40] sm:$0xff] }
 0x3f1   :  { %v1826_v1 = vadd.f32 1.0, %v1802_v41  ;;  %v1756_v35 = vmul.f32 %v3311_v39, %v1732_v43  ;;  %v1710_v22 = vmul.f32 %v3324_v16, %v1686_v33  ;;  %v1543_v36 = vadd.f32 1.0, %v2284_v38 }
 0x3f2   :  { %v1827_v20 = vadd.f32 1.0, %v1803_v54  ;;  %v1757_v23 = vmul.f32 %v3316_v4, %v1733_v12  ;;  %2295 = vtanh.f32 %v1501_v50  ;;  %v1502_v58 = vmul.f32 0.5, %v3225_v5  ;;  %v2354_v54 = vld [vmem:[#allocation2 + $0x48] sm:$0xff] }
 0x3f3   :  { %v1850_v2 = vmul.f32 %v3277_v10, %v1826_v1  ;;  %v1780_v8 = vadd.f32 0.5, %v1756_v35  ;;  %v1734_v21 = vadd.f32 0.16666667, %v1710_v22  ;;  %v1567_v40 = vmul.f32 0.5, %v1543_v36 }
 0x3f4   :  { %v2286_v46 = vpop.eup %2285  ;;  %v1851_v25 = vmul.f32 %v3285_v37, %v1827_v20  ;;  %v1781_v26 = vadd.f32 0.5, %v1757_v23  ;;  %2297 = vtanh.f32 %v1502_v58  ;;  %v1503_v3 = vmul.f32 0.5, %v3233_v18 }
 0x3f5   :  { %v1874_v44 = vadd.f32 1.0, %v1850_v2  ;;  %v1804_v63 = vmul.f32 %v3311_v39, %v1780_v8  ;;  %v1758_v19 = vmul.f32 %v3324_v16, %v1734_v21  ;;  %v3366_v27 = vadd.f32 -0.5, %v1567_v40 }
 0x3f6   :  { %v1875_v5 = vadd.f32 1.0, %v1851_v25  ;;  %v1805_v10 = vmul.f32 %v3316_v4, %v1781_v26  ;;  %v1544_v13 = vadd.f32 1.0, %v2286_v46  ;;  %2299 = vtanh.f32 %v1503_v3 }
 0x3f7   :  { %v2288_v51 = vpop.eup %2287  ;;  %v1898_v45 = vmul.f32 1.6487212, %v1874_v44  ;;  %v1828_v32 = vadd.f32 1.0, %v1804_v63  ;;  %v1782_v37 = vadd.f32 0.5, %v1758_v19  ;;  %v1615_v29 = vmul.f32 0.0013888889, %v3366_v27 }
 0x3f8   :  { %v2290_v24 = vpop.eup %2289  ;;  %v1899_v18 = vmul.f32 1.6487212, %v1875_v5  ;;  %v1829_v52 = vadd.f32 1.0, %v1805_v10  ;;  %v1568_v62 = vmul.f32 0.5, %v1544_v13  ;;  %v1545_v53 = vadd.f32 1.0, %v2288_v51  ;;  %v2356_v10 = vld [vmem:[#allocation2 + $0x58] sm:$0xff] }
 0x3f9   :  { %v2292_v6 = vpop.eup %2291  ;;  %v3371_v31 = vadd.f32 %v1898_v45, %v3235_v57  ;;  %v1938_v47 = vmul.f32 %v2353_v11, %v1898_v45  ;;  %v1852_v41 = vmul.f32 %v3311_v39, %v1828_v32  ;;  %v1806_v43 = vmul.f32 %v3324_v16, %v1782_v37 }
 0x3fa   :  { %v2294_v33 = vpop.eup %2293  ;;  %v3376_v38 = vadd.f32 %v1899_v18, %v3242_v48  ;;  %v1939_v12 = vmul.f32 %v2354_v54, %v1899_v18  ;;  %v1853_v50 = vmul.f32 %v3316_v4, %v1829_v52  ;;  %v1639_v1 = vadd.f32 0.008333334, %v1615_v29 }
 0x3fb   :  { %v3380_v35 = vadd.f32 %v1938_v47, %v3253_v55  ;;  %v1876_v57 = vadd.f32 1.0, %v1852_v41  ;;  %v1830_v22 = vadd.f32 1.0, %v1806_v43  ;;  %v3382_v36 = vadd.f32 -0.5, %v1568_v62 }
 0x3fc   :  { %v2296_v20 = vpop.eup %2295  ;;  %v3385_v39 = vadd.f32 %v1939_v12, %v3259_v9  ;;  %v1877_v23 = vadd.f32 1.0, %v1853_v50  ;;  %v1663_v48 = vmul.f32 %v3366_v27, %v1639_v1  ;;  %v1569_v58 = vmul.f32 0.5, %v1545_v53  ;;  %v2355_v9 = vld [vmem:[#allocation2 + $0x50] sm:$0xff]  ;;  %v2357_v53 = vld [vmem:[#allocation2 + $0x60] sm:$0xff] }
 0x3fd   :  { %v1900_v2 = vmul.f32 1.6487212, %v1876_v57  ;;  %v1854_v8 = vmul.f32 %v3324_v16, %v1830_v22  ;;  %v1616_v4 = vmul.f32 0.0013888889, %v3382_v36  ;;  %v1546_v21 = vadd.f32 1.0, %v2290_v24 }
 0x3fe   :  { %v2298_v55 = vpop.eup %2297  ;;  %v1901_v40 = vmul.f32 1.6487212, %v1877_v23  ;;  %v1687_v46 = vadd.f32 0.041666668, %v1663_v48  ;;  %v3390_v25 = vadd.f32 -0.5, %v1569_v58  ;;  %v1547_v26 = vadd.f32 1.0, %v2292_v6 }
 0x3ff   :  { %v3393_v3 = vadd.f32 %v1900_v2, %v3261_v15  ;;  %v1940_v44 = vmul.f32 %v2355_v9, %v1900_v2  ;;  %v1878_v63 = vadd.f32 1.0, %v1854_v8  ;;  %v1640_v19 = vadd.f32 0.008333334, %v1616_v4 }
 0x400   :  { %v3395_v5 = vpop.eup %2299  ;;  %v3398_v16 = vadd.f32 %v1901_v40, %v3266_v0  ;;  %v1941_v13 = vmul.f32 %v2356_v10, %v1901_v40  ;;  %v1711_v51 = vmul.f32 %v3366_v27, %v1687_v46  ;;  %v1617_v45 = vmul.f32 0.0013888889, %v3390_v25 }
 0x401   :  { %v3403_v32 = vadd.f32 %v1940_v44, %v3275_v17  ;;  %v1902_v15 = vmul.f32 1.6487212, %v1878_v63  ;;  %v1664_v37 = vmul.f32 %v3382_v36, %v1640_v19  ;;  %v1570_v29 = vmul.f32 0.5, %v1546_v21 }
 0x402   :  { %v3407_v24 = vadd.f32 %v1941_v13, %v3283_v60  ;;  %v1735_v18 = vadd.f32 0.16666667, %v1711_v51  ;;  %v1641_v52 = vadd.f32 0.008333334, %v1617_v45  ;;  %v1571_v0 = vmul.f32 0.5, %v1547_v26 }
 0x403   :  { %v3410_v62 = vadd.f32 %v1902_v15, %v3287_v42  ;;  %v1942_v6 = vmul.f32 %v2357_v53, %v1902_v15  ;;  %v1688_v11 = vadd.f32 0.041666668, %v1664_v37  ;;  %v3412_v47 = vadd.f32 -0.5, %v1570_v29 }
 0x404   :  { %v1759_v17 = vmul.f32 %v3366_v27, %v1735_v18  ;;  %v1665_v41 = vmul.f32 %v3390_v25, %v1641_v52  ;;  %v3416_v43 = vadd.f32 -0.5, %v1571_v0  ;;  %v1548_v54 = vadd.f32 1.0, %v2294_v33 }
 0x405   :  { %v3419_v60 = vadd.f32 %v1942_v6, %v3301_v56  ;;  %v1712_v12 = vmul.f32 %v3382_v36, %v1688_v11  ;;  %v1618_v42 = vmul.f32 0.0013888889, %v3412_v47  ;;  %v1549_v50 = vadd.f32 1.0, %v2296_v20 }
 0x406   :  { %v1783_v1 = vadd.f32 0.5, %v1759_v17  ;;  %v1689_v57 = vadd.f32 0.041666668, %v1665_v41  ;;  %v1619_v22 = vmul.f32 0.0013888889, %v3416_v43  ;;  %v1572_v23 = vmul.f32 0.5, %v1548_v54 }
 0x407   :  { %v1736_v48 = vadd.f32 0.16666667, %v1712_v12  ;;  %v1642_v58 = vadd.f32 0.008333334, %v1618_v42  ;;  %v1573_v2 = vmul.f32 0.5, %v1549_v50  ;;  %v1550_v8 = vadd.f32 1.0, %v2298_v55 }
 0x408   :  { %v1807_v4 = vmul.f32 %v3366_v27, %v1783_v1  ;;  %v1713_v33 = vmul.f32 %v3390_v25, %v1689_v57  ;;  %v1643_v56 = vadd.f32 0.008333334, %v1619_v22  ;;  %v3426_v21 = vadd.f32 -0.5, %v1572_v23 }
 0x409   :  { %v1760_v40 = vmul.f32 %v3382_v36, %v1736_v48  ;;  %v1666_v20 = vmul.f32 %v3412_v47, %v1642_v58  ;;  %v3430_v46 = vadd.f32 -0.5, %v1573_v2  ;;  %v1574_v26 = vmul.f32 0.5, %v1550_v8 }
 0x40a   :  { %v1831_v9 = vadd.f32 1.0, %v1807_v4  ;;  %v1737_v44 = vadd.f32 0.16666667, %v1713_v33  ;;  %v1667_v63 = vmul.f32 %v3416_v43, %v1643_v56  ;;  %v1620_v55 = vmul.f32 0.0013888889, %v3426_v21  ;;  %v2358_v4 = vld [vmem:[#allocation2 + $0x68] sm:$0xff] }
 0x40b   :  { %v1784_v19 = vadd.f32 0.5, %v1760_v40  ;;  %v1690_v10 = vadd.f32 0.041666668, %v1666_v20  ;;  %v1621_v13 = vmul.f32 0.0013888889, %v3430_v46  ;;  %v3435_v51 = vadd.f32 -0.5, %v1574_v26 }
 0x40c   :  { %v1855_v45 = vmul.f32 %v3366_v27, %v1831_v9  ;;  %v1761_v15 = vmul.f32 %v3390_v25, %v1737_v44  ;;  %v1691_v37 = vadd.f32 0.041666668, %v1667_v63  ;;  %v1644_v29 = vadd.f32 0.008333334, %v1620_v55 }
 0x40d   :  { %v1808_v18 = vmul.f32 %v3382_v36, %v1784_v19  ;;  %v1714_v52 = vmul.f32 %v3412_v47, %v1690_v10  ;;  %v1645_v0 = vadd.f32 0.008333334, %v1621_v13  ;;  %v1622_v53 = vmul.f32 0.0013888889, %v3435_v51 }
 0x40e   :  { %v1879_v6 = vadd.f32 1.0, %v1855_v45  ;;  %v1785_v11 = vadd.f32 0.5, %v1761_v15  ;;  %v1715_v17 = vmul.f32 %v3416_v43, %v1691_v37  ;;  %v1668_v41 = vmul.f32 %v3426_v21, %v1644_v29 }
 0x40f   :  { %v1832_v54 = vadd.f32 1.0, %v1808_v18  ;;  %v1738_v12 = vadd.f32 0.16666667, %v1714_v52  ;;  %v1669_v27 = vmul.f32 %v3430_v46, %v1645_v0  ;;  %v1646_v42 = vadd.f32 0.008333334, %v1622_v53 }
 0x410   :  { %v1903_v50 = vmul.f32 1.6487212, %v1879_v6  ;;  %v1809_v1 = vmul.f32 %v3390_v25, %v1785_v11  ;;  %v1739_v57 = vadd.f32 0.16666667, %v1715_v17  ;;  %v1692_v22 = vadd.f32 0.041666668, %v1668_v41 }
 0x411   :  { %v1856_v23 = vmul.f32 %v3382_v36, %v1832_v54  ;;  %v1762_v48 = vmul.f32 %v3412_v47, %v1738_v12  ;;  %v1693_v58 = vadd.f32 0.041666668, %v1669_v27  ;;  %v1670_v2 = vmul.f32 %v3435_v51, %v1646_v42  ;;  %v2360_v42 = vld [vmem:[#allocation2 + $0x78] sm:$0xff] }
 0x412   :  { %v3450_v8 = vadd.f32 %v1903_v50, %v3292_v7  ;;  %v1943_v33 = vmul.f32 %v2358_v4, %v1903_v50  ;;  %v1833_v56 = vadd.f32 1.0, %v1809_v1  ;;  %v1763_v40 = vmul.f32 %v3416_v43, %v1739_v57 }
 0x413   :  { %v1880_v20 = vadd.f32 1.0, %v1856_v23  ;;  %v1786_v26 = vadd.f32 0.5, %v1762_v48  ;;  %v1716_v9 = vmul.f32 %v3426_v21, %v1692_v22  ;;  %v1717_v44 = vmul.f32 %v3430_v46, %v1693_v58 }
 0x414   :  { %v3456_v36 = vadd.f32 %v1943_v33, %v3307_v34  ;;  %v1857_v63 = vmul.f32 %v3390_v25, %v1833_v56  ;;  %v1787_v55 = vadd.f32 0.5, %v1763_v40  ;;  %v1694_v19 = vadd.f32 0.041666668, %v1670_v2  ;;  %v2359_v34 = vld [vmem:[#allocation2 + $0x70] sm:$0xff] }
 0x415   :  { %v1904_v7 = vmul.f32 1.6487212, %v1880_v20  ;;  %v1810_v10 = vmul.f32 %v3412_v47, %v1786_v26  ;;  %v1740_v13 = vadd.f32 0.16666667, %v1716_v9  ;;  %v1741_v45 = vadd.f32 0.16666667, %v1717_v44 }
 0x416   :  { %v1881_v15 = vadd.f32 1.0, %v1857_v63  ;;  %v1811_v37 = vmul.f32 %v3416_v43, %v1787_v55  ;;  %v1718_v29 = vmul.f32 %v3435_v51, %v1694_v19  ;;  %v1551_v18 = vadd.f32 1.0, %v3395_v5  ;;  %v2361_v44 = vld [vmem:[#allocation5 + $0x40] sm:$0xff]  ;;  %v2362_v19 = vld [vmem:[#allocation5 + $0x48] sm:$0xff] }
 0x417   :  { %v3464_v52 = vadd.f32 %v1904_v7, %v3321_v61  ;;  %v1944_v0 = vmul.f32 %v2359_v34, %v1904_v7  ;;  %v1834_v25 = vadd.f32 1.0, %v1810_v10  ;;  %v1764_v53 = vmul.f32 %v3426_v21, %v1740_v13 }
 0x418   :  { %v1905_v6 = vmul.f32 1.6487212, %v1881_v15  ;;  %v1835_v11 = vadd.f32 1.0, %v1811_v37  ;;  %v1765_v17 = vmul.f32 %v3430_v46, %v1741_v45  ;;  %v1742_v41 = vadd.f32 0.16666667, %v1718_v29 }
 0x419   :  { %v3469_v54 = vadd.f32 %v1944_v0, %v3334_v30  ;;  %v1858_v12 = vmul.f32 %v3412_v47, %v1834_v25  ;;  %v1788_v27 = vadd.f32 0.5, %v1764_v53  ;;  %v1575_v5 = vmul.f32 0.5, %v1551_v18  ;;  %v2363_v0 = vld [vmem:[#allocation5 + $0x50] sm:$0xff] }
 0x41a   :  { %v3473_v61 = vadd.f32 %v1905_v6, %v3326_v59  ;;  %v1945_v50 = vmul.f32 %v2360_v42, %v1905_v6  ;;  %v1859_v1 = vmul.f32 %v3416_v43, %v1835_v11  ;;  %v1789_v57 = vadd.f32 0.5, %v1765_v17  ;;  %v2364_v6 = vld [vmem:[#allocation5 + $0x58] sm:$0xff] }
 0x41b   :  { %v1882_v22 = vadd.f32 1.0, %v1858_v12  ;;  %v1812_v23 = vmul.f32 %v3426_v21, %v1788_v27  ;;  %v1766_v48 = vmul.f32 %v3435_v51, %v1742_v41  ;;  %v3478_v58 = vadd.f32 -0.5, %v1575_v5  ;;  %v2365_v5 = vld [vmem:[#allocation5 + $0x60] sm:$0xff] }
 0x41c   :  { %v3481_v30 = vadd.f32 %v1945_v50, %v3342_v28  ;;  %v1883_v47 = vadd.f32 1.0, %v1859_v1  ;;  %v1813_v2 = vmul.f32 %v3430_v46, %v1789_v57  ;;  %v1504_v59 = vmul.f32 0.5, %v3240_v49 }
 0x41d   :  { %v1906_v4 = vmul.f32 1.6487212, %v1882_v22  ;;  %v1836_v33 = vadd.f32 1.0, %v1812_v23  ;;  %v1790_v56 = vadd.f32 0.5, %v1766_v48  ;;  %v1623_v43 = vmul.f32 0.0013888889, %v3478_v58 }
 0x41e   :  { %v1907_v40 = vmul.f32 1.6487212, %v1883_v47  ;;  %v1837_v20 = vadd.f32 1.0, %v1813_v2  ;;  %2301 = vtanh.f32 %v1504_v59  ;;  %v1505_v26 = vmul.f32 0.5, %v3247_v14 }
 0x41f   :  { %v1922_v9 = vadd.f32 %v3371_v31, %v1906_v4  ;;  %v1954_v28 = vmul.f32 %v2361_v44, %v1906_v4  ;;  %v1860_v63 = vmul.f32 %v3426_v21, %v1836_v33  ;;  %v1814_v55 = vmul.f32 %v3435_v51, %v1790_v56 }
 0x420   :  { %v1923_v49 = vadd.f32 %v3376_v38, %v1907_v40  ;;  %v1955_v7 = vmul.f32 %v2362_v19, %v1907_v40  ;;  %v1861_v10 = vmul.f32 %v3430_v46, %v1837_v20  ;;  %v1647_v13 = vadd.f32 0.008333334, %v1623_v43 }
 0x421   :  { %v1962_v45 = vadd.f32 %v1954_v28, %v3380_v35  ;;  %2303 = vrcp.f32 %v1922_v9  ;;  %v1884_v15 = vadd.f32 1.0, %v1860_v63  ;;  %v1838_v14 = vadd.f32 1.0, %v1814_v55 }
 0x422   :  { %v1963_v31 = vadd.f32 %v1955_v7, %v3385_v39  ;;  %2305 = vrcp.f32 %v1923_v49  ;;  %v1885_v37 = vadd.f32 1.0, %v1861_v10  ;;  %v1671_v21 = vmul.f32 %v3478_v58, %v1647_v13 }
 0x423   :  { %v1908_v29 = vmul.f32 1.6487212, %v1884_v15  ;;  %v1862_v18 = vmul.f32 %v3435_v51, %v1838_v14  ;;  %2307 = vtanh.f32 %v1505_v26  ;;  %v2366_v14 = vld [vmem:[#allocation5 + $0x68] sm:$0xff] }
 0x424   :  { %v1909_v38 = vmul.f32 1.6487212, %v1885_v37  ;;  %v1695_v34 = vadd.f32 0.041666668, %v1671_v21 }
 0x425   :  { %v1924_v46 = vadd.f32 %v3393_v3, %v1908_v29  ;;  %v1956_v25 = vmul.f32 %v2363_v0, %v1908_v29  ;;  %v1886_v35 = vadd.f32 1.0, %v1862_v18 }
 0x426   :  { %v1925_v53 = vadd.f32 %v3398_v16, %v1909_v38  ;;  %v1957_v11 = vmul.f32 %v2364_v6, %v1909_v38  ;;  %v1719_v39 = vmul.f32 %v3478_v58, %v1695_v34 }
 0x427   :  { %v1964_v17 = vadd.f32 %v1956_v25, %v3403_v32  ;;  %2309 = vrcp.f32 %v1924_v46  ;;  %v1910_v41 = vmul.f32 1.6487212, %v1886_v35 }
 0x428   :  { %v2302_v12 = vpop.eup %2301  ;;  %v1965_v51 = vadd.f32 %v1957_v11, %v3407_v24  ;;  %2311 = vrcp.f32 %v1925_v53  ;;  %v1743_v27 = vadd.f32 0.16666667, %v1719_v39 }
 0x429   :  { %v1926_v3 = vadd.f32 %v3410_v62, %v1910_v41  ;;  %v1958_v42 = vmul.f32 %v2365_v5, %v1910_v41  ;;  %v1552_v50 = vadd.f32 1.0, %v2302_v12 }
 0x42a   :  { %v1767_v16 = vmul.f32 %v3478_v58, %v1743_v27  ;;  %v2367_v27 = vld [vmem:[#allocation5 + $0x70] sm:$0xff] }
 0x42b   :  { %v2304_v1 = vpop.eup %2303  ;;  %v1966_v57 = vadd.f32 %v1958_v42, %v3419_v60  ;;  %2313 = vrcp.f32 %v1926_v3  ;;  %v1576_v22 = vmul.f32 0.5, %v1552_v50 }
 0x42c   :  { %v2306_v32 = vpop.eup %2305  ;;  %v1971_v23 = vmul.f32 %v2304_v1, %v1962_v45  ;;  %v1791_v48 = vadd.f32 0.5, %v1767_v16  ;;  %v2368_v1 = vld [vmem:[#allocation5 + $0x78] sm:$0xff] }
 0x42d   :  { %v2308_v47 = vpop.eup %2307  ;;  %v1973_v2 = vmul.f32 %v2306_v32, %v1963_v31  ;;  %v2103_v24 = vadd.f32 -0.5, %v1576_v22 }
 0x42e   :  { %1987 = vst [vmem:[#allocation8 + $0x40] sm:$0xff] %v1971_v23  ;;  %v1815_v59 = vmul.f32 %v3478_v58, %v1791_v48  ;;  %v1553_v62 = vadd.f32 1.0, %v2308_v47 }
 0x42f   :  { %1988 = vst [vmem:[#allocation8 + $0x48] sm:$0xff] %v1973_v2  ;;  %v1624_v4 = vmul.f32 0.0013888889, %v2103_v24 }
 0x430   :  { %v1839_v33 = vadd.f32 1.0, %v1815_v59  ;;  %v1577_v56 = vmul.f32 0.5, %v1553_v62 }
 0x431   :  { %v2310_v43 = vpop.eup %2309  ;;  %v1648_v40 = vadd.f32 0.008333334, %v1624_v4 }
 0x432   :  { %v2312_v20 = vpop.eup %2311  ;;  %v1975_v60 = vmul.f32 %v2310_v43, %v1964_v17  ;;  %v1863_v26 = vmul.f32 %v3478_v58, %v1839_v33  ;;  %v2104_v9 = vadd.f32 -0.5, %v1577_v56 }
 0x433   :  { %v1977_v44 = vmul.f32 %v2312_v20, %v1965_v51  ;;  %v1672_v28 = vmul.f32 %v2103_v24, %v1648_v40 }
 0x434   :  { %1989 = vst [vmem:[#allocation8 + $0x50] sm:$0xff] %v1975_v60  ;;  %v1887_v63 = vadd.f32 1.0, %v1863_v26  ;;  %v1625_v55 = vmul.f32 0.0013888889, %v2104_v9 }
 0x435   :  { %v2314_v49 = vpop.eup %2313  ;;  %1990 = vst [vmem:[#allocation8 + $0x58] sm:$0xff] %v1977_v44  ;;  %v1696_v19 = vadd.f32 0.041666668, %v1672_v28 }
 0x436   :  { %v1979_v7 = vmul.f32 %v2314_v49, %v1966_v57  ;;  %v1911_v10 = vmul.f32 1.6487212, %v1887_v63  ;;  %v1649_v13 = vadd.f32 0.008333334, %v1625_v55 }
 0x437   :  { %v1720_v45 = vmul.f32 %v2103_v24, %v1696_v19 }
 0x438   :  { %1991 = vst [vmem:[#allocation8 + $0x60] sm:$0xff] %v1979_v7  ;;  %v1927_v15 = vadd.f32 %v3450_v8, %v1911_v10  ;;  %v1959_v31 = vmul.f32 %v2366_v14, %v1911_v10  ;;  %v1673_v37 = vmul.f32 %v2104_v9, %v1649_v13 }
 0x439   :  { %v1744_v58 = vadd.f32 0.16666667, %v1720_v45 }
 0x43a   :  { %v1967_v21 = vadd.f32 %v1959_v31, %v3456_v36  ;;  %2315 = vrcp.f32 %v1927_v15  ;;  %v1697_v29 = vadd.f32 0.041666668, %v1673_v37 }
 0x43b   :  { %v1768_v18 = vmul.f32 %v2103_v24, %v1744_v58 }
 0x43c   :  { %v1721_v38 = vmul.f32 %v2104_v9, %v1697_v29 }
 0x43d   :  { %v1792_v34 = vadd.f32 0.5, %v1768_v18 }
 0x43e   :  { %v1745_v46 = vadd.f32 0.16666667, %v1721_v38 }
 0x43f   :  { %v1816_v0 = vmul.f32 %v2103_v24, %v1792_v34 }
 0x440   :  { %v1769_v25 = vmul.f32 %v2104_v9, %v1745_v46 }
 0x441   :  { %v1840_v35 = vadd.f32 1.0, %v1816_v0 }
 0x442   :  { %v1793_v53 = vadd.f32 0.5, %v1769_v25 }
 0x443   :  { %v1864_v6 = vmul.f32 %v2103_v24, %v1840_v35 }
 0x444   :  { %v2316_v11 = vpop.eup %2315  ;;  %v1817_v39 = vmul.f32 %v2104_v9, %v1793_v53 }
 0x445   :  { %v1981_v8 = vmul.f32 %v2316_v11, %v1967_v21  ;;  %v1888_v17 = vadd.f32 1.0, %v1864_v6 }
 0x446   :  { %v1841_v41 = vadd.f32 1.0, %v1817_v39 }
 0x447   :  { %1992 = vst [vmem:[#allocation8 + $0x68] sm:$0xff] %v1981_v8  ;;  %v1912_v12 = vmul.f32 1.6487212, %v1888_v17 }
 0x448   :  { %v1865_v51 = vmul.f32 %v2104_v9, %v1841_v41 }
 0x449   :  { %v1928_v36 = vadd.f32 %v3464_v52, %v1912_v12  ;;  %v1960_v3 = vmul.f32 %v2367_v27, %v1912_v12 }
 0x44a   :  { %v1889_v5 = vadd.f32 1.0, %v1865_v51 }
 0x44b   :  { %v1968_v42 = vadd.f32 %v1960_v3, %v3469_v54  ;;  %2317 = vrcp.f32 %v1928_v36 }
 0x44c   :  { %v1913_v50 = vmul.f32 1.6487212, %v1889_v5 }
 0x44e   :  { %v1929_v16 = vadd.f32 %v3473_v61, %v1913_v50  ;;  %v1961_v57 = vmul.f32 %v2368_v1, %v1913_v50 }
 0x450   :  { %v1969_v22 = vadd.f32 %v1961_v57, %v3481_v30  ;;  %2319 = vrcp.f32 %v1929_v16 }
 0x455   :  { %v2318_v32 = vpop.eup %2317 }
 0x456   :  { %v1983_v23 = vmul.f32 %v2318_v32, %v1968_v42 }
 0x458   :  { %1993 = vst [vmem:[#allocation8 + $0x70] sm:$0xff] %v1983_v23 }
 0x45a   :  { %v2320_v52 = vpop.eup %2319 }
 0x45b   :  { %v1985_v48 = vmul.f32 %v2320_v52, %v1969_v22 }
 0x45d   :  { %1994 = vst [vmem:[#allocation8 + $0x78] sm:$0xff] %v1985_v48 }
 0x45e   :  { %2446 = shalt.err (!%p2443_p0)
}
 0x45f   :  { %s2447_s14 = scalar_lea.hbm %s3533_s6, 2048 }
 0x460   :  { %p2448_p1 = scmp.ne.s32.totalorder %s3533_s6, %s2447_s14  ;;  %p2451_p2 = scmp.lt.u32.totalorder %s2447_s14, %s3533_s6 }
 0x462   :  { %p2453_p3 = pnand %p2451_p2, %p2448_p1 }
 0x464   :  { %2456 = shalt.err (!%p2453_p3)
}
 0x465   :  { %2006 = dma.vmem_to_hbm [thread:$0]  %s2001_s24, 2048, %s3533_s6, [#allocation4], %s2465_s9, %s2465_s9, %s2466_s10  }
 0x466   :  { %2461 = dma.done.wait [#allocation4], 2048  }
 0x467   :  { %2462 = vsyncadd [#allocation4], 4294965248 }
 0x468   :  { %2010 = vsyncpa [#allocation3], 1 }
 0x469   :  { %2011 = vsyncpa [#allocation6], 1 }
 0x46a   :  { %2012 = vsyncpa [#allocation4], 1 }

</bundles_post_ra>
